<compile_context>
chip_gen: v5e
topology: v5e:2x2
jax: 0.10.0
libtpu: 0.0.40
codegen_flags: <defaults>
</compile_context>

<pallas_src>
import functools

import jax
import jax.numpy as jnp
import numpy as np
from jax import lax
from jax.experimental import pallas as pl
from jax.experimental.pallas import tpu as pltpu


# ---------------- kernel helpers (traced inside the Pallas body) ----------------

def _layernorm(h, g, b, eps=1e-5):
    mu = jnp.mean(h, axis=-1, keepdims=True)
    var = jnp.mean((h - mu) ** 2, axis=-1, keepdims=True)
    return (h - mu) * lax.rsqrt(var + eps) * g + b


def _erf_poly(z):
    # Abramowitz & Stegun 7.1.26 (max abs error ~1.5e-7): exact-erf GELU without
    # relying on an erf primitive lowering inside Mosaic.
    a1, a2, a3 = 0.254829592, -0.284496736, 1.421413741
    a4, a5, p = -1.453152027, 1.061405429, 0.3275911
    az = jnp.abs(z)
    t = 1.0 / (1.0 + p * az)
    poly = ((((a5 * t + a4) * t + a3) * t + a2) * t + a1) * t
    y = 1.0 - poly * jnp.exp(-(az * az))
    return jnp.where(z >= 0, y, -y)


def _gelu_exact(u):
    return 0.5 * u * (1.0 + _erf_poly(u * 0.7071067811865476))


# ---------------- the Pallas kernel (one grid step == one batch element) --------

def decoder_block_kernel(num_heads, scale,
                         x_ref, enc_ref,
                         g1, b1, g2, b2, g3, b3,
                         wq1, wk1, wv1, wp1, bp1,
                         wq2, wk2, wv2, wp2, bp2,
                         wfc1, bfc1, wfc2, bfc2,
                         out_ref):
    H = num_heads
    _, Nt, C = x_ref.shape
    Ni = enc_ref.shape[1]
    dh = C // H
    bf16 = jnp.bfloat16
    f32 = jnp.float32

    x = x_ref[0].astype(f32)          # (Nt, C)  residual stream stays f32
    enc_bf = enc_ref[0]               # (Ni, C)  already bf16 (matmul operand only)

    # Causal mask, (Nt, Nt) only, broadcast over heads.  Finite large-negative so a
    # masked row can never produce -inf - (-inf) = NaN.
    row = lax.broadcasted_iota(jnp.int32, (Nt, Nt), 0)
    col = lax.broadcasted_iota(jnp.int32, (Nt, Nt), 1)
    causal_keep = col <= row
    neg_big = jnp.float32(-1e30)

    def split_heads(t2d, n):
        # (n, C) f32 -> (H, n, dh) bf16   (post-matmul head view; cheap relayout)
        return t2d.reshape(n, H, dh).transpose(1, 0, 2).astype(bf16)

    def attend(q2d, k2d, v2d, n_kv, wp, bp, causal):
        # q2d: (Nt, C) f32 (already scaled), k2d/v2d: (n_kv, C) f32.
        qh = split_heads(q2d, Nt)                         # (H, Nt, dh)
        kh = split_heads(k2d, n_kv)                       # (H, n_kv, dh)
        vh = split_heads(v2d, n_kv)                       # (H, n_kv, dh)
        # Contract last dims of both operands -> MXU trans_b form (no K transpose).
        s = jnp.einsum('hnd,hmd->hnm', qh, kh,
                       preferred_element_type=f32)        # (H, Nt, n_kv) f32
        if causal:
            s = jnp.where(causal_keep, s, neg_big)
        s = s - jnp.max(s, axis=-1, keepdims=True)
        p = jnp.exp(s)
        p = p * pl.reciprocal(jnp.sum(p, axis=-1, keepdims=True), approx=True)
        o = jnp.einsum('hnm,hmd->hnd', p.astype(bf16), vh,
                       preferred_element_type=f32)        # (H, Nt, dh) f32
        # Contract heads directly in the output projection: (Nt, H*dh) x (C, C).
        o2 = o.transpose(1, 0, 2).reshape(Nt, C).astype(bf16)
        return jnp.dot(o2, wp[...], preferred_element_type=f32) + bp[...]

    # ---- 1) causal self-attention:  x = x + CausalAttn(LN1(x)) ----
    h = _layernorm(x, g1[...], b1[...])
    hb = h.astype(bf16)
    q = jnp.dot(hb, wq1[...], preferred_element_type=f32) * scale   # scale folded once
    k = jnp.dot(hb, wk1[...], preferred_element_type=f32)
    v = jnp.dot(hb, wv1[...], preferred_element_type=f32)
    x = x + attend(q, k, v, Nt, wp1, bp1, causal=True)

    # ---- 2) cross-attention:  x = x + CrossAttn(LN2(x), enc) ----
    h = _layernorm(x, g2[...], b2[...])
    hb = h.astype(bf16)
    q = jnp.dot(hb, wq2[...], preferred_element_type=f32) * scale
    k = jnp.dot(enc_bf, wk2[...], preferred_element_type=f32)
    v = jnp.dot(enc_bf, wv2[...], preferred_element_type=f32)
    x = x + attend(q, k, v, Ni, wp2, bp2, causal=False)

    # ---- 3) MLP:  x = x + MLP(LN3(x)) ----
    h = _layernorm(x, g3[...], b3[...])
    u = jnp.dot(h.astype(bf16), wfc1[...], preferred_element_type=f32) + bfc1[...]
    u = _gelu_exact(u)                                   # exact-erf GELU, f32
    y = jnp.dot(u.astype(bf16), wfc2[...], preferred_element_type=f32) + bfc2[...]
    x = x + y

    out_ref[0] = x.astype(out_ref.dtype)


# ---------------- wrapper ----------------

def decoder_block(x, enc, params, num_heads):
    B, Nt, C = x.shape
    _, Ni, _ = enc.shape
    dh = C // num_heads
    scale = float(dh ** -0.5)
    bf = jnp.bfloat16

    (g1, b1, g2, b2, g3, b3, wqkv, wprj1, bprj1,
     wq, wkv, wprj2, bprj2, wfc1, bfc1, wfc2, bfc2) = params

    # Trace-time weight prep (free): split fused qkv / kv so the kernel never
    # lane-slices a projection result, and cast matmul weights to bf16 once.
    wq1 = wqkv[:, :C].astype(bf)
    wk1 = wqkv[:, C:2 * C].astype(bf)
    wv1 = wqkv[:, 2 * C:].astype(bf)
    wp1 = wprj1.astype(bf)
    wq2 = wq.astype(bf)
    wk2 = wkv[:, :C].astype(bf)
    wv2 = wkv[:, C:].astype(bf)
    wp2 = wprj2.astype(bf)
    wfc1b = wfc1.astype(bf)
    wfc2b = wfc2.astype(bf)

    kparams = (g1, b1, g2, b2, g3, b3,
               wq1, wk1, wv1, wp1, bprj1,
               wq2, wk2, wv2, wp2, bprj2,
               wfc1b, bfc1, wfc2b, bfc2)

    enc_bf = enc.astype(bf)   # enc is only ever a matmul operand (halves its DMA)

    def row_spec(shape):      # per-batch activation/output tiles
        return pl.BlockSpec((1,) + tuple(shape[1:]), lambda bidx: (bidx, 0, 0))

    def invariant_spec(shape):   # grid-invariant weights / biases
        nd = len(shape)
        return pl.BlockSpec(tuple(shape), lambda bidx: (0,) * nd)

    in_specs = [row_spec(x.shape), row_spec(enc.shape)] + \
               [invariant_spec(p.shape) for p in kparams]

    out = pl.pallas_call(
        functools.partial(decoder_block_kernel, num_heads, scale),
        out_shape=jax.ShapeDtypeStruct((B, Nt, C), x.dtype),
        grid=(B,),
        in_specs=in_specs,
        out_specs=row_spec((B, Nt, C)),
        compiler_params=pltpu.CompilerParams(
            dimension_semantics=("parallel",)),   # >=2 blocks -> both TCs on v7x
    )(x, enc_bf, *kparams)
    return out


# ---------------- pure-JAX reference (for correctness check) ----------------

def decoder_block_ref(x, enc, params, num_heads):
    (g1, b1, g2, b2, g3, b3, wqkv, wprj1, bprj1,
     wq, wkv, wprj2, bprj2, wfc1, bfc1, wfc2, bfc2) = params
    B, Nt, C = x.shape
    dh = C // num_heads
    scale = dh ** -0.5

    def ln(h, g, b):
        mu = jnp.mean(h, axis=-1, keepdims=True)
        var = jnp.mean((h - mu) ** 2, axis=-1, keepdims=True)
        return (h - mu) / jnp.sqrt(var + 1e-5) * g + b

    def heads(t):  # (B, N, C) -> (B, H, N, dh)
        return t.reshape(t.shape[0], t.shape[1], num_heads, dh).transpose(0, 2, 1, 3)

    def attn(q, k, v, causal):
        s = jnp.einsum('bhnd,bhmd->bhnm', q, k) * scale
        if causal:
            N, M = s.shape[-2:]
            keep = jnp.tril(jnp.ones((N, M), dtype=bool))
            s = jnp.where(keep, s, -jnp.inf)
        p = jax.nn.softmax(s, axis=-1)
        o = jnp.einsum('bhnm,bhmd->bhnd', p, v)
        return o.transpose(0, 2, 1, 3).reshape(o.shape[0], o.shape[2], C)

    # causal self-attn
    h = ln(x, g1, b1)
    qkv = h @ wqkv
    q, k, v = qkv[..., :C], qkv[..., C:2 * C], qkv[..., 2 * C:]
    a = attn(heads(q), heads(k), heads(v), True) @ wprj1 + bprj1
    x = x + a
    # cross-attn
    h = ln(x, g2, b2)
    q = h @ wq
    kv = enc @ wkv
    k, v = kv[..., :C], kv[..., C:]
    a = attn(heads(q), heads(k), heads(v), False) @ wprj2 + bprj2
    x = x + a
    # mlp
    h = ln(x, g3, b3)
    u = jax.nn.gelu(h @ wfc1 + bfc1, approximate=False)
    x = x + (u @ wfc2 + bfc2)
    return x


# ---------------- main ----------------

if __name__ == "__main__":
    B, Nt, Ni, C = 2, 8, 16, 32
    num_heads = 4
    mlp_hidden = int(C * 4.0)

    key = jax.random.PRNGKey(0)
    ks = jax.random.split(key, 16)

    def rnd(k, shape, s=0.05):
        return (jax.random.normal(k, shape, jnp.float32) * s).astype(jnp.float32)

    # Parameters (weights pre-transposed to (in, out); qkv_bias=False -> no q/k/v biases).
    g1 = jnp.ones((1, C), jnp.float32); b1 = jnp.zeros((1, C), jnp.float32)
    g2 = jnp.ones((1, C), jnp.float32); b2 = jnp.zeros((1, C), jnp.float32)
    g3 = jnp.ones((1, C), jnp.float32); b3 = jnp.zeros((1, C), jnp.float32)
    wqkv = rnd(ks[0], (C, 3 * C))
    wprj1 = rnd(ks[1], (C, C)); bprj1 = rnd(ks[2], (1, C))
    wq = rnd(ks[3], (C, C)); wkv = rnd(ks[4], (C, 2 * C))
    wprj2 = rnd(ks[5], (C, C)); bprj2 = rnd(ks[6], (1, C))
    wfc1 = rnd(ks[7], (C, mlp_hidden)); bfc1 = rnd(ks[8], (1, mlp_hidden))
    wfc2 = rnd(ks[9], (mlp_hidden, C)); bfc2 = rnd(ks[10], (1, C))

    params = (g1, b1, g2, b2, g3, b3, wqkv, wprj1, bprj1,
              wq, wkv, wprj2, bprj2, wfc1, bfc1, wfc2, bfc2)

    x = jax.random.normal(ks[11], (B, Nt, C), jnp.float32)
    enc = jax.random.normal(ks[12], (B, Ni, C), jnp.float32)

    out = decoder_block(x, enc, params, num_heads)
    out = jax.block_until_ready(out)

    ref = decoder_block_ref(x, enc, params, num_heads)
    np.testing.assert_allclose(np.asarray(out), np.asarray(ref), rtol=2e-2, atol=2e-2)

    print("KERNEL_OK")
</pallas_src>

<mosaic_0001>
module attributes {stable_mosaic.version = 11 : i64} {
  func.func @decoder_block_kernel(%arg0: i32, %arg1: memref<1x8x32xf32, #tpu.memory_space<vmem>>, %arg2: memref<1x16x32xbf16, #tpu.memory_space<vmem>>, %arg3: memref<1x32xf32, #tpu.memory_space<vmem>>, %arg4: memref<1x32xf32, #tpu.memory_space<vmem>>, %arg5: memref<1x32xf32, #tpu.memory_space<vmem>>, %arg6: memref<1x32xf32, #tpu.memory_space<vmem>>, %arg7: memref<1x32xf32, #tpu.memory_space<vmem>>, %arg8: memref<1x32xf32, #tpu.memory_space<vmem>>, %arg9: memref<32x32xbf16, #tpu.memory_space<vmem>>, %arg10: memref<32x32xbf16, #tpu.memory_space<vmem>>, %arg11: memref<32x32xbf16, #tpu.memory_space<vmem>>, %arg12: memref<32x32xbf16, #tpu.memory_space<vmem>>, %arg13: memref<1x32xf32, #tpu.memory_space<vmem>>, %arg14: memref<32x32xbf16, #tpu.memory_space<vmem>>, %arg15: memref<32x32xbf16, #tpu.memory_space<vmem>>, %arg16: memref<32x32xbf16, #tpu.memory_space<vmem>>, %arg17: memref<32x32xbf16, #tpu.memory_space<vmem>>, %arg18: memref<1x32xf32, #tpu.memory_space<vmem>>, %arg19: memref<32x128xbf16, #tpu.memory_space<vmem>>, %arg20: memref<1x128xf32, #tpu.memory_space<vmem>>, %arg21: memref<128x32xbf16, #tpu.memory_space<vmem>>, %arg22: memref<1x32xf32, #tpu.memory_space<vmem>>, %arg23: memref<1x8x32xf32, #tpu.memory_space<vmem>>) attributes {dimension_semantics = [#tpu.dimension_semantics<parallel>], iteration_bounds = array<i64: 2>, scalar_prefetch = 0 : i64, scratch_operands = 0 : i64, tpu.core_type = #tpu.core_type<tc>, window_params = [{transform_indices = @transform_0, window_bounds = array<i64: 1, 8, 32>}, {transform_indices = @transform_1, window_bounds = array<i64: 1, 16, 32>}, {pipeline_mode = #tpu.pipeline_mode<synchronous>, transform_indices = @transform_2, window_bounds = array<i64: 1, 32>}, {pipeline_mode = #tpu.pipeline_mode<synchronous>, transform_indices = @transform_3, window_bounds = array<i64: 1, 32>}, {pipeline_mode = #tpu.pipeline_mode<synchronous>, transform_indices = @transform_4, window_bounds = array<i64: 1, 32>}, {pipeline_mode = #tpu.pipeline_mode<synchronous>, transform_indices = @transform_5, window_bounds = array<i64: 1, 32>}, {pipeline_mode = #tpu.pipeline_mode<synchronous>, transform_indices = @transform_6, window_bounds = array<i64: 1, 32>}, {pipeline_mode = #tpu.pipeline_mode<synchronous>, transform_indices = @transform_7, window_bounds = array<i64: 1, 32>}, {pipeline_mode = #tpu.pipeline_mode<synchronous>, transform_indices = @transform_8, window_bounds = array<i64: 32, 32>}, {pipeline_mode = #tpu.pipeline_mode<synchronous>, transform_indices = @transform_9, window_bounds = array<i64: 32, 32>}, {pipeline_mode = #tpu.pipeline_mode<synchronous>, transform_indices = @transform_10, window_bounds = array<i64: 32, 32>}, {pipeline_mode = #tpu.pipeline_mode<synchronous>, transform_indices = @transform_11, window_bounds = array<i64: 32, 32>}, {pipeline_mode = #tpu.pipeline_mode<synchronous>, transform_indices = @transform_12, window_bounds = array<i64: 1, 32>}, {pipeline_mode = #tpu.pipeline_mode<synchronous>, transform_indices = @transform_13, window_bounds = array<i64: 32, 32>}, {pipeline_mode = #tpu.pipeline_mode<synchronous>, transform_indices = @transform_14, window_bounds = array<i64: 32, 32>}, {pipeline_mode = #tpu.pipeline_mode<synchronous>, transform_indices = @transform_15, window_bounds = array<i64: 32, 32>}, {pipeline_mode = #tpu.pipeline_mode<synchronous>, transform_indices = @transform_16, window_bounds = array<i64: 32, 32>}, {pipeline_mode = #tpu.pipeline_mode<synchronous>, transform_indices = @transform_17, window_bounds = array<i64: 1, 32>}, {pipeline_mode = #tpu.pipeline_mode<synchronous>, transform_indices = @transform_18, window_bounds = array<i64: 32, 128>}, {pipeline_mode = #tpu.pipeline_mode<synchronous>, transform_indices = @transform_19, window_bounds = array<i64: 1, 128>}, {pipeline_mode = #tpu.pipeline_mode<synchronous>, transform_indices = @transform_20, window_bounds = array<i64: 128, 32>}, {pipeline_mode = #tpu.pipeline_mode<synchronous>, transform_indices = @transform_21, window_bounds = array<i64: 1, 32>}, {transform_indices = @transform_22, window_bounds = array<i64: 1, 8, 32>}]} {
    %c0 = arith.constant 0 : index
    %c0_0 = arith.constant 0 : index
    %c0_1 = arith.constant 0 : index
    %0 = vector.load %arg1[%c0, %c0_0, %c0_1] : memref<1x8x32xf32, #tpu.memory_space<vmem>>, vector<1x8x32xf32>
    %1 = vector.shape_cast %0 : vector<1x8x32xf32> to vector<8x32xf32>
    %c0_2 = arith.constant 0 : index
    %c0_3 = arith.constant 0 : index
    %c0_4 = arith.constant 0 : index
    %2 = vector.load %arg2[%c0_2, %c0_3, %c0_4] : memref<1x16x32xbf16, #tpu.memory_space<vmem>>, vector<1x16x32xbf16>
    %3 = vector.shape_cast %2 : vector<1x16x32xbf16> to vector<16x32xbf16>
    %4 = tpu.iota {dimensions = array<i32: 0>} : vector<8x8xi32>
    %5 = tpu.iota {dimensions = array<i32: 1>} : vector<8x8xi32>
    %6 = arith.cmpi sle, %5, %4 : vector<8x8xi32>
    %c0_5 = arith.constant 0 : index
    %c0_6 = arith.constant 0 : index
    %7 = vector.load %arg3[%c0_5, %c0_6] : memref<1x32xf32, #tpu.memory_space<vmem>>, vector<1x32xf32>
    %c0_7 = arith.constant 0 : index
    %c0_8 = arith.constant 0 : index
    %8 = vector.load %arg4[%c0_7, %c0_8] : memref<1x32xf32, #tpu.memory_space<vmem>>, vector<1x32xf32>
    %cst = arith.constant dense<0.000000e+00> : vector<8xf32>
    %9 = vector.multi_reduction <add>, %1, %cst [1] : vector<8x32xf32> to vector<8xf32>
    %10 = vector.shape_cast %9 : vector<8xf32> to vector<8x1xf32>
    %cst_9 = arith.constant 3.200000e+01 : f32
    %11 = vector.broadcast %cst_9 : f32 to vector<8x1xf32>
    %12 = arith.divf %10, %11 : vector<8x1xf32>
    %13 = vector.broadcast %12 : vector<8x1xf32> to vector<8x32xf32>
    %14 = arith.subf %1, %13 : vector<8x32xf32>
    %15 = arith.mulf %14, %14 : vector<8x32xf32>
    %cst_10 = arith.constant dense<0.000000e+00> : vector<8xf32>
    %16 = vector.multi_reduction <add>, %15, %cst_10 [1] : vector<8x32xf32> to vector<8xf32>
    %17 = vector.shape_cast %16 : vector<8xf32> to vector<8x1xf32>
    %cst_11 = arith.constant 3.200000e+01 : f32
    %18 = vector.broadcast %cst_11 : f32 to vector<8x1xf32>
    %19 = arith.divf %17, %18 : vector<8x1xf32>
    %20 = vector.broadcast %12 : vector<8x1xf32> to vector<8x32xf32>
    %21 = arith.subf %1, %20 : vector<8x32xf32>
    %cst_12 = arith.constant 9.99999974E-6 : f32
    %22 = vector.broadcast %cst_12 : f32 to vector<8x1xf32>
    %23 = arith.addf %19, %22 : vector<8x1xf32>
    %24 = math.rsqrt %23 : vector<8x1xf32>
    %25 = vector.broadcast %24 : vector<8x1xf32> to vector<8x32xf32>
    %26 = arith.mulf %21, %25 : vector<8x32xf32>
    %27 = vector.broadcast %7 : vector<1x32xf32> to vector<8x32xf32>
    %28 = arith.mulf %26, %27 : vector<8x32xf32>
    %29 = vector.broadcast %8 : vector<1x32xf32> to vector<8x32xf32>
    %30 = arith.addf %28, %29 : vector<8x32xf32>
    %31 = arith.truncf %30 : vector<8x32xf32> to vector<8x32xbf16>
    %c0_13 = arith.constant 0 : index
    %c0_14 = arith.constant 0 : index
    %32 = vector.load %arg9[%c0_13, %c0_14] : memref<32x32xbf16, #tpu.memory_space<vmem>>, vector<32x32xbf16>
    %cst_15 = arith.constant dense<0.000000e+00> : vector<8x32xf32>
    %33 = tpu.matmul %31, %32, %cst_15 {dimension_numbers = #tpu.dot_dimension_numbers<[1], [0], [0], [1], [0, 0, 1, 1], [], []>} : vector<8x32xbf16>, vector<32x32xbf16>, vector<8x32xf32> -> vector<8x32xf32>
    %cst_16 = arith.constant 0.353553385 : f32
    %34 = vector.broadcast %cst_16 : f32 to vector<8x32xf32>
    %35 = arith.mulf %33, %34 : vector<8x32xf32>
    %c0_17 = arith.constant 0 : index
    %c0_18 = arith.constant 0 : index
    %36 = vector.load %arg10[%c0_17, %c0_18] : memref<32x32xbf16, #tpu.memory_space<vmem>>, vector<32x32xbf16>
    %cst_19 = arith.constant dense<0.000000e+00> : vector<8x32xf32>
    %37 = tpu.matmul %31, %36, %cst_19 {dimension_numbers = #tpu.dot_dimension_numbers<[1], [0], [0], [1], [0, 0, 1, 1], [], []>} : vector<8x32xbf16>, vector<32x32xbf16>, vector<8x32xf32> -> vector<8x32xf32>
    %c0_20 = arith.constant 0 : index
    %c0_21 = arith.constant 0 : index
    %38 = vector.load %arg11[%c0_20, %c0_21] : memref<32x32xbf16, #tpu.memory_space<vmem>>, vector<32x32xbf16>
    %cst_22 = arith.constant dense<0.000000e+00> : vector<8x32xf32>
    %39 = tpu.matmul %31, %38, %cst_22 {dimension_numbers = #tpu.dot_dimension_numbers<[1], [0], [0], [1], [0, 0, 1, 1], [], []>} : vector<8x32xbf16>, vector<32x32xbf16>, vector<8x32xf32> -> vector<8x32xf32>
    %40 = vector.shape_cast %35 : vector<8x32xf32> to vector<8x4x8xf32>
    %41 = tpu.transpose %40, [1, 0, 2] : vector<8x4x8xf32> -> vector<4x8x8xf32>
    %42 = arith.truncf %41 : vector<4x8x8xf32> to vector<4x8x8xbf16>
    %43 = vector.shape_cast %37 : vector<8x32xf32> to vector<8x4x8xf32>
    %44 = tpu.transpose %43, [1, 0, 2] : vector<8x4x8xf32> -> vector<4x8x8xf32>
    %45 = arith.truncf %44 : vector<4x8x8xf32> to vector<4x8x8xbf16>
    %46 = vector.shape_cast %39 : vector<8x32xf32> to vector<8x4x8xf32>
    %47 = tpu.transpose %46, [1, 0, 2] : vector<8x4x8xf32> -> vector<4x8x8xf32>
    %48 = arith.truncf %47 : vector<4x8x8xf32> to vector<4x8x8xbf16>
    "tpu.trace_start"() <{level = 10 : i32, message = "hnd,hmd->hnm"}> : () -> ()
    %cst_23 = arith.constant dense<0.000000e+00> : vector<4x8x8xf32>
    %49 = tpu.matmul %42, %45, %cst_23 {dimension_numbers = #tpu.dot_dimension_numbers<[2], [2], [1], [1], [0, 0, 0, 1, 1, 1], [0], [0]>} : vector<4x8x8xbf16>, vector<4x8x8xbf16>, vector<4x8x8xf32> -> vector<4x8x8xf32>
    %cst_24 = arith.constant -1.000000e+30 : f32
    "tpu.trace_stop"() : () -> ()
    %50 = vector.shape_cast %6 : vector<8x8xi1> to vector<1x8x8xi1>
    %51 = vector.broadcast %50 : vector<1x8x8xi1> to vector<4x8x8xi1>
    %52 = vector.broadcast %cst_24 : f32 to vector<4x8x8xf32>
    %53 = arith.select %51, %49, %52 : vector<4x8x8xi1>, vector<4x8x8xf32>
    %cst_25 = arith.constant dense<0xFF800000> : vector<4x8xf32>
    %54 = vector.multi_reduction <maximumf>, %53, %cst_25 [2] : vector<4x8x8xf32> to vector<4x8xf32>
    %55 = vector.shape_cast %54 : vector<4x8xf32> to vector<4x8x1xf32>
    %56 = vector.broadcast %55 : vector<4x8x1xf32> to vector<4x8x8xf32>
    %57 = arith.subf %53, %56 : vector<4x8x8xf32>
    %58 = math.exp %57 : vector<4x8x8xf32>
    %cst_26 = arith.constant dense<0.000000e+00> : vector<4x8xf32>
    %59 = vector.multi_reduction <add>, %58, %cst_26 [2] : vector<4x8x8xf32> to vector<4x8xf32>
    %60 = vector.shape_cast %59 : vector<4x8xf32> to vector<4x8x1xf32>
    %61 = tpu.reciprocal %60 {approx = true} : vector<4x8x1xf32> -> vector<4x8x1xf32>
    %62 = vector.broadcast %61 : vector<4x8x1xf32> to vector<4x8x8xf32>
    %63 = arith.mulf %58, %62 : vector<4x8x8xf32>
    %64 = arith.truncf %63 : vector<4x8x8xf32> to vector<4x8x8xbf16>
    "tpu.trace_start"() <{level = 10 : i32, message = "hnm,hmd->hnd"}> : () -> ()
    %cst_27 = arith.constant dense<0.000000e+00> : vector<4x8x8xf32>
    %65 = tpu.matmul %64, %48, %cst_27 {dimension_numbers = #tpu.dot_dimension_numbers<[2], [1], [1], [2], [0, 0, 0, 1, 1, 2], [0], [0]>} : vector<4x8x8xbf16>, vector<4x8x8xbf16>, vector<4x8x8xf32> -> vector<4x8x8xf32>
    "tpu.trace_stop"() : () -> ()
    %66 = tpu.transpose %65, [1, 0, 2] : vector<4x8x8xf32> -> vector<8x4x8xf32>
    %67 = vector.shape_cast %66 : vector<8x4x8xf32> to vector<8x32xf32>
    %68 = arith.truncf %67 : vector<8x32xf32> to vector<8x32xbf16>
    %c0_28 = arith.constant 0 : index
    %c0_29 = arith.constant 0 : index
    %69 = vector.load %arg12[%c0_28, %c0_29] : memref<32x32xbf16, #tpu.memory_space<vmem>>, vector<32x32xbf16>
    %cst_30 = arith.constant dense<0.000000e+00> : vector<8x32xf32>
    %70 = tpu.matmul %68, %69, %cst_30 {dimension_numbers = #tpu.dot_dimension_numbers<[1], [0], [0], [1], [0, 0, 1, 1], [], []>} : vector<8x32xbf16>, vector<32x32xbf16>, vector<8x32xf32> -> vector<8x32xf32>
    %c0_31 = arith.constant 0 : index
    %c0_32 = arith.constant 0 : index
    %71 = vector.load %arg13[%c0_31, %c0_32] : memref<1x32xf32, #tpu.memory_space<vmem>>, vector<1x32xf32>
    %72 = vector.broadcast %71 : vector<1x32xf32> to vector<8x32xf32>
    %73 = arith.addf %70, %72 : vector<8x32xf32>
    %74 = arith.addf %1, %73 : vector<8x32xf32>
    %c0_33 = arith.constant 0 : index
    %c0_34 = arith.constant 0 : index
    %75 = vector.load %arg5[%c0_33, %c0_34] : memref<1x32xf32, #tpu.memory_space<vmem>>, vector<1x32xf32>
    %c0_35 = arith.constant 0 : index
    %c0_36 = arith.constant 0 : index
    %76 = vector.load %arg6[%c0_35, %c0_36] : memref<1x32xf32, #tpu.memory_space<vmem>>, vector<1x32xf32>
    %cst_37 = arith.constant dense<0.000000e+00> : vector<8xf32>
    %77 = vector.multi_reduction <add>, %74, %cst_37 [1] : vector<8x32xf32> to vector<8xf32>
    %78 = vector.shape_cast %77 : vector<8xf32> to vector<8x1xf32>
    %cst_38 = arith.constant 3.200000e+01 : f32
    %79 = vector.broadcast %cst_38 : f32 to vector<8x1xf32>
    %80 = arith.divf %78, %79 : vector<8x1xf32>
    %81 = vector.broadcast %80 : vector<8x1xf32> to vector<8x32xf32>
    %82 = arith.subf %74, %81 : vector<8x32xf32>
    %83 = arith.mulf %82, %82 : vector<8x32xf32>
    %cst_39 = arith.constant dense<0.000000e+00> : vector<8xf32>
    %84 = vector.multi_reduction <add>, %83, %cst_39 [1] : vector<8x32xf32> to vector<8xf32>
    %85 = vector.shape_cast %84 : vector<8xf32> to vector<8x1xf32>
    %cst_40 = arith.constant 3.200000e+01 : f32
    %86 = vector.broadcast %cst_40 : f32 to vector<8x1xf32>
    %87 = arith.divf %85, %86 : vector<8x1xf32>
    %88 = vector.broadcast %80 : vector<8x1xf32> to vector<8x32xf32>
    %89 = arith.subf %74, %88 : vector<8x32xf32>
    %cst_41 = arith.constant 9.99999974E-6 : f32
    %90 = vector.broadcast %cst_41 : f32 to vector<8x1xf32>
    %91 = arith.addf %87, %90 : vector<8x1xf32>
    %92 = math.rsqrt %91 : vector<8x1xf32>
    %93 = vector.broadcast %92 : vector<8x1xf32> to vector<8x32xf32>
    %94 = arith.mulf %89, %93 : vector<8x32xf32>
    %95 = vector.broadcast %75 : vector<1x32xf32> to vector<8x32xf32>
    %96 = arith.mulf %94, %95 : vector<8x32xf32>
    %97 = vector.broadcast %76 : vector<1x32xf32> to vector<8x32xf32>
    %98 = arith.addf %96, %97 : vector<8x32xf32>
    %99 = arith.truncf %98 : vector<8x32xf32> to vector<8x32xbf16>
    %c0_42 = arith.constant 0 : index
    %c0_43 = arith.constant 0 : index
    %100 = vector.load %arg14[%c0_42, %c0_43] : memref<32x32xbf16, #tpu.memory_space<vmem>>, vector<32x32xbf16>
    %cst_44 = arith.constant dense<0.000000e+00> : vector<8x32xf32>
    %101 = tpu.matmul %99, %100, %cst_44 {dimension_numbers = #tpu.dot_dimension_numbers<[1], [0], [0], [1], [0, 0, 1, 1], [], []>} : vector<8x32xbf16>, vector<32x32xbf16>, vector<8x32xf32> -> vector<8x32xf32>
    %cst_45 = arith.constant 0.353553385 : f32
    %102 = vector.broadcast %cst_45 : f32 to vector<8x32xf32>
    %103 = arith.mulf %101, %102 : vector<8x32xf32>
    %c0_46 = arith.constant 0 : index
    %c0_47 = arith.constant 0 : index
    %104 = vector.load %arg15[%c0_46, %c0_47] : memref<32x32xbf16, #tpu.memory_space<vmem>>, vector<32x32xbf16>
    %cst_48 = arith.constant dense<0.000000e+00> : vector<16x32xf32>
    %105 = tpu.matmul %3, %104, %cst_48 {dimension_numbers = #tpu.dot_dimension_numbers<[1], [0], [0], [1], [0, 0, 1, 1], [], []>} : vector<16x32xbf16>, vector<32x32xbf16>, vector<16x32xf32> -> vector<16x32xf32>
    %c0_49 = arith.constant 0 : index
    %c0_50 = arith.constant 0 : index
    %106 = vector.load %arg16[%c0_49, %c0_50] : memref<32x32xbf16, #tpu.memory_space<vmem>>, vector<32x32xbf16>
    %cst_51 = arith.constant dense<0.000000e+00> : vector<16x32xf32>
    %107 = tpu.matmul %3, %106, %cst_51 {dimension_numbers = #tpu.dot_dimension_numbers<[1], [0], [0], [1], [0, 0, 1, 1], [], []>} : vector<16x32xbf16>, vector<32x32xbf16>, vector<16x32xf32> -> vector<16x32xf32>
    %108 = vector.shape_cast %103 : vector<8x32xf32> to vector<8x4x8xf32>
    %109 = tpu.transpose %108, [1, 0, 2] : vector<8x4x8xf32> -> vector<4x8x8xf32>
    %110 = arith.truncf %109 : vector<4x8x8xf32> to vector<4x8x8xbf16>
    %111 = vector.shape_cast %105 : vector<16x32xf32> to vector<16x4x8xf32>
    %112 = tpu.transpose %111, [1, 0, 2] : vector<16x4x8xf32> -> vector<4x16x8xf32>
    %113 = arith.truncf %112 : vector<4x16x8xf32> to vector<4x16x8xbf16>
    %114 = vector.shape_cast %107 : vector<16x32xf32> to vector<16x4x8xf32>
    %115 = tpu.transpose %114, [1, 0, 2] : vector<16x4x8xf32> -> vector<4x16x8xf32>
    %116 = arith.truncf %115 : vector<4x16x8xf32> to vector<4x16x8xbf16>
    "tpu.trace_start"() <{level = 10 : i32, message = "hnd,hmd->hnm"}> : () -> ()
    %cst_52 = arith.constant dense<0.000000e+00> : vector<4x8x16xf32>
    %117 = tpu.matmul %110, %113, %cst_52 {dimension_numbers = #tpu.dot_dimension_numbers<[2], [2], [1], [1], [0, 0, 0, 1, 1, 1], [0], [0]>} : vector<4x8x8xbf16>, vector<4x16x8xbf16>, vector<4x8x16xf32> -> vector<4x8x16xf32>
    "tpu.trace_stop"() : () -> ()
    %cst_53 = arith.constant dense<0xFF800000> : vector<4x8xf32>
    %118 = vector.multi_reduction <maximumf>, %117, %cst_53 [2] : vector<4x8x16xf32> to vector<4x8xf32>
    %119 = vector.shape_cast %118 : vector<4x8xf32> to vector<4x8x1xf32>
    %120 = vector.broadcast %119 : vector<4x8x1xf32> to vector<4x8x16xf32>
    %121 = arith.subf %117, %120 : vector<4x8x16xf32>
    %122 = math.exp %121 : vector<4x8x16xf32>
    %cst_54 = arith.constant dense<0.000000e+00> : vector<4x8xf32>
    %123 = vector.multi_reduction <add>, %122, %cst_54 [2] : vector<4x8x16xf32> to vector<4x8xf32>
    %124 = vector.shape_cast %123 : vector<4x8xf32> to vector<4x8x1xf32>
    %125 = tpu.reciprocal %124 {approx = true} : vector<4x8x1xf32> -> vector<4x8x1xf32>
    %126 = vector.broadcast %125 : vector<4x8x1xf32> to vector<4x8x16xf32>
    %127 = arith.mulf %122, %126 : vector<4x8x16xf32>
    %128 = arith.truncf %127 : vector<4x8x16xf32> to vector<4x8x16xbf16>
    "tpu.trace_start"() <{level = 10 : i32, message = "hnm,hmd->hnd"}> : () -> ()
    %cst_55 = arith.constant dense<0.000000e+00> : vector<4x8x8xf32>
    %129 = tpu.matmul %128, %116, %cst_55 {dimension_numbers = #tpu.dot_dimension_numbers<[2], [1], [1], [2], [0, 0, 0, 1, 1, 2], [0], [0]>} : vector<4x8x16xbf16>, vector<4x16x8xbf16>, vector<4x8x8xf32> -> vector<4x8x8xf32>
    "tpu.trace_stop"() : () -> ()
    %130 = tpu.transpose %129, [1, 0, 2] : vector<4x8x8xf32> -> vector<8x4x8xf32>
    %131 = vector.shape_cast %130 : vector<8x4x8xf32> to vector<8x32xf32>
    %132 = arith.truncf %131 : vector<8x32xf32> to vector<8x32xbf16>
    %c0_56 = arith.constant 0 : index
    %c0_57 = arith.constant 0 : index
    %133 = vector.load %arg17[%c0_56, %c0_57] : memref<32x32xbf16, #tpu.memory_space<vmem>>, vector<32x32xbf16>
    %cst_58 = arith.constant dense<0.000000e+00> : vector<8x32xf32>
    %134 = tpu.matmul %132, %133, %cst_58 {dimension_numbers = #tpu.dot_dimension_numbers<[1], [0], [0], [1], [0, 0, 1, 1], [], []>} : vector<8x32xbf16>, vector<32x32xbf16>, vector<8x32xf32> -> vector<8x32xf32>
    %c0_59 = arith.constant 0 : index
    %c0_60 = arith.constant 0 : index
    %135 = vector.load %arg18[%c0_59, %c0_60] : memref<1x32xf32, #tpu.memory_space<vmem>>, vector<1x32xf32>
    %136 = vector.broadcast %135 : vector<1x32xf32> to vector<8x32xf32>
    %137 = arith.addf %134, %136 : vector<8x32xf32>
    %138 = arith.addf %74, %137 : vector<8x32xf32>
    %c0_61 = arith.constant 0 : index
    %c0_62 = arith.constant 0 : index
    %139 = vector.load %arg7[%c0_61, %c0_62] : memref<1x32xf32, #tpu.memory_space<vmem>>, vector<1x32xf32>
    %c0_63 = arith.constant 0 : index
    %c0_64 = arith.constant 0 : index
    %140 = vector.load %arg8[%c0_63, %c0_64] : memref<1x32xf32, #tpu.memory_space<vmem>>, vector<1x32xf32>
    %cst_65 = arith.constant dense<0.000000e+00> : vector<8xf32>
    %141 = vector.multi_reduction <add>, %138, %cst_65 [1] : vector<8x32xf32> to vector<8xf32>
    %142 = vector.shape_cast %141 : vector<8xf32> to vector<8x1xf32>
    %cst_66 = arith.constant 3.200000e+01 : f32
    %143 = vector.broadcast %cst_66 : f32 to vector<8x1xf32>
    %144 = arith.divf %142, %143 : vector<8x1xf32>
    %145 = vector.broadcast %144 : vector<8x1xf32> to vector<8x32xf32>
    %146 = arith.subf %138, %145 : vector<8x32xf32>
    %147 = arith.mulf %146, %146 : vector<8x32xf32>
    %cst_67 = arith.constant dense<0.000000e+00> : vector<8xf32>
    %148 = vector.multi_reduction <add>, %147, %cst_67 [1] : vector<8x32xf32> to vector<8xf32>
    %149 = vector.shape_cast %148 : vector<8xf32> to vector<8x1xf32>
    %cst_68 = arith.constant 3.200000e+01 : f32
    %150 = vector.broadcast %cst_68 : f32 to vector<8x1xf32>
    %151 = arith.divf %149, %150 : vector<8x1xf32>
    %152 = vector.broadcast %144 : vector<8x1xf32> to vector<8x32xf32>
    %153 = arith.subf %138, %152 : vector<8x32xf32>
    %cst_69 = arith.constant 9.99999974E-6 : f32
    %154 = vector.broadcast %cst_69 : f32 to vector<8x1xf32>
    %155 = arith.addf %151, %154 : vector<8x1xf32>
    %156 = math.rsqrt %155 : vector<8x1xf32>
    %157 = vector.broadcast %156 : vector<8x1xf32> to vector<8x32xf32>
    %158 = arith.mulf %153, %157 : vector<8x32xf32>
    %159 = vector.broadcast %139 : vector<1x32xf32> to vector<8x32xf32>
    %160 = arith.mulf %158, %159 : vector<8x32xf32>
    %161 = vector.broadcast %140 : vector<1x32xf32> to vector<8x32xf32>
    %162 = arith.addf %160, %161 : vector<8x32xf32>
    %163 = arith.truncf %162 : vector<8x32xf32> to vector<8x32xbf16>
    %c0_70 = arith.constant 0 : index
    %c0_71 = arith.constant 0 : index
    %164 = vector.load %arg19[%c0_70, %c0_71] : memref<32x128xbf16, #tpu.memory_space<vmem>>, vector<32x128xbf16>
    %cst_72 = arith.constant dense<0.000000e+00> : vector<8x128xf32>
    %165 = tpu.matmul %163, %164, %cst_72 {dimension_numbers = #tpu.dot_dimension_numbers<[1], [0], [0], [1], [0, 0, 1, 1], [], []>} : vector<8x32xbf16>, vector<32x128xbf16>, vector<8x128xf32> -> vector<8x128xf32>
    %c0_73 = arith.constant 0 : index
    %c0_74 = arith.constant 0 : index
    %166 = vector.load %arg20[%c0_73, %c0_74] : memref<1x128xf32, #tpu.memory_space<vmem>>, vector<1x128xf32>
    %167 = vector.broadcast %166 : vector<1x128xf32> to vector<8x128xf32>
    %168 = arith.addf %165, %167 : vector<8x128xf32>
    %cst_75 = arith.constant 5.000000e-01 : f32
    %169 = vector.broadcast %cst_75 : f32 to vector<8x128xf32>
    %170 = arith.mulf %169, %168 : vector<8x128xf32>
    %cst_76 = arith.constant 0.707106769 : f32
    %171 = vector.broadcast %cst_76 : f32 to vector<8x128xf32>
    %172 = arith.mulf %168, %171 : vector<8x128xf32>
    %173 = math.absf %172 : vector<8x128xf32>
    %cst_77 = arith.constant 0.327591091 : f32
    %174 = vector.broadcast %cst_77 : f32 to vector<8x128xf32>
    %175 = arith.mulf %174, %173 : vector<8x128xf32>
    %cst_78 = arith.constant 1.000000e+00 : f32
    %176 = vector.broadcast %cst_78 : f32 to vector<8x128xf32>
    %177 = arith.addf %176, %175 : vector<8x128xf32>
    %cst_79 = arith.constant 1.000000e+00 : f32
    %178 = vector.broadcast %cst_79 : f32 to vector<8x128xf32>
    %179 = arith.divf %178, %177 : vector<8x128xf32>
    %cst_80 = arith.constant 1.06140542 : f32
    %180 = vector.broadcast %cst_80 : f32 to vector<8x128xf32>
    %181 = arith.mulf %180, %179 : vector<8x128xf32>
    %cst_81 = arith.constant -1.45315206 : f32
    %182 = vector.broadcast %cst_81 : f32 to vector<8x128xf32>
    %183 = arith.addf %181, %182 : vector<8x128xf32>
    %184 = arith.mulf %183, %179 : vector<8x128xf32>
    %cst_82 = arith.constant 1.42141378 : f32
    %185 = vector.broadcast %cst_82 : f32 to vector<8x128xf32>
    %186 = arith.addf %184, %185 : vector<8x128xf32>
    %187 = arith.mulf %186, %179 : vector<8x128xf32>
    %cst_83 = arith.constant -0.284496725 : f32
    %188 = vector.broadcast %cst_83 : f32 to vector<8x128xf32>
    %189 = arith.addf %187, %188 : vector<8x128xf32>
    %190 = arith.mulf %189, %179 : vector<8x128xf32>
    %cst_84 = arith.constant 0.254829586 : f32
    %191 = vector.broadcast %cst_84 : f32 to vector<8x128xf32>
    %192 = arith.addf %190, %191 : vector<8x128xf32>
    %193 = arith.mulf %192, %179 : vector<8x128xf32>
    %194 = arith.mulf %173, %173 : vector<8x128xf32>
    %cst_85 = arith.constant 0.000000e+00 : f32
    %195 = vector.broadcast %cst_85 : f32 to vector<8x128xf32>
    %196 = arith.subf %195, %194 : vector<8x128xf32>
    %197 = math.exp %196 : vector<8x128xf32>
    %198 = arith.mulf %193, %197 : vector<8x128xf32>
    %cst_86 = arith.constant 1.000000e+00 : f32
    %199 = vector.broadcast %cst_86 : f32 to vector<8x128xf32>
    %200 = arith.subf %199, %198 : vector<8x128xf32>
    %cst_87 = arith.constant 0.000000e+00 : f32
    %201 = vector.broadcast %cst_87 : f32 to vector<8x128xf32>
    %202 = arith.cmpf oge, %172, %201 : vector<8x128xf32>
    %cst_88 = arith.constant 0.000000e+00 : f32
    %203 = vector.broadcast %cst_88 : f32 to vector<8x128xf32>
    %204 = arith.subf %203, %200 : vector<8x128xf32>
    %205 = arith.select %202, %200, %204 : vector<8x128xi1>, vector<8x128xf32>
    %cst_89 = arith.constant 1.000000e+00 : f32
    %206 = vector.broadcast %cst_89 : f32 to vector<8x128xf32>
    %207 = arith.addf %206, %205 : vector<8x128xf32>
    %208 = arith.mulf %170, %207 : vector<8x128xf32>
    %209 = arith.truncf %208 : vector<8x128xf32> to vector<8x128xbf16>
    %c0_90 = arith.constant 0 : index
    %c0_91 = arith.constant 0 : index
    %210 = vector.load %arg21[%c0_90, %c0_91] : memref<128x32xbf16, #tpu.memory_space<vmem>>, vector<128x32xbf16>
    %cst_92 = arith.constant dense<0.000000e+00> : vector<8x32xf32>
    %211 = tpu.matmul %209, %210, %cst_92 {dimension_numbers = #tpu.dot_dimension_numbers<[1], [0], [0], [1], [0, 0, 1, 1], [], []>} : vector<8x128xbf16>, vector<128x32xbf16>, vector<8x32xf32> -> vector<8x32xf32>
    %c0_93 = arith.constant 0 : index
    %c0_94 = arith.constant 0 : index
    %212 = vector.load %arg22[%c0_93, %c0_94] : memref<1x32xf32, #tpu.memory_space<vmem>>, vector<1x32xf32>
    %213 = vector.broadcast %212 : vector<1x32xf32> to vector<8x32xf32>
    %214 = arith.addf %211, %213 : vector<8x32xf32>
    %215 = arith.addf %138, %214 : vector<8x32xf32>
    %c0_95 = arith.constant 0 : index
    %c0_96 = arith.constant 0 : index
    %c0_97 = arith.constant 0 : index
    %216 = vector.load %arg23[%c0_95, %c0_96, %c0_97] : memref<1x8x32xf32, #tpu.memory_space<vmem>>, vector<1x8x32xf32>
    %217 = vector.shape_cast %216 : vector<1x8x32xf32> to vector<8x32xf32>
    %218 = vector.shape_cast %215 : vector<8x32xf32> to vector<1x8x32xf32>
    tpu.vector_store %arg23[%c0_95, %c0_96, %c0_97], %218 {strides = array<i32>} : memref<1x8x32xf32, #tpu.memory_space<vmem>>, vector<1x8x32xf32>,
    return
  }
  func.func @transform_0(%arg0: i32) -> (i32, i32, i32) {
    %c0_i32 = arith.constant 0 : i32
    %c0_i32_0 = arith.constant 0 : i32
    %c0_i32_1 = arith.constant 0 : i32
    return %arg0, %c0_i32, %c0_i32_0 : i32, i32, i32
  }
  func.func @transform_1(%arg0: i32) -> (i32, i32, i32) {
    %c0_i32 = arith.constant 0 : i32
    %c0_i32_0 = arith.constant 0 : i32
    %c0_i32_1 = arith.constant 0 : i32
    return %arg0, %c0_i32, %c0_i32_0 : i32, i32, i32
  }
  func.func @transform_2(%arg0: i32) -> (i32, i32) {
    %c0_i32 = arith.constant 0 : i32
    %c0_i32_0 = arith.constant 0 : i32
    %c0_i32_1 = arith.constant 0 : i32
    return %c0_i32, %c0_i32_0 : i32, i32
  }
  func.func @transform_3(%arg0: i32) -> (i32, i32) {
    %c0_i32 = arith.constant 0 : i32
    %c0_i32_0 = arith.constant 0 : i32
    %c0_i32_1 = arith.constant 0 : i32
    return %c0_i32, %c0_i32_0 : i32, i32
  }
  func.func @transform_4(%arg0: i32) -> (i32, i32) {
    %c0_i32 = arith.constant 0 : i32
    %c0_i32_0 = arith.constant 0 : i32
    %c0_i32_1 = arith.constant 0 : i32
    return %c0_i32, %c0_i32_0 : i32, i32
  }
  func.func @transform_5(%arg0: i32) -> (i32, i32) {
    %c0_i32 = arith.constant 0 : i32
    %c0_i32_0 = arith.constant 0 : i32
    %c0_i32_1 = arith.constant 0 : i32
    return %c0_i32, %c0_i32_0 : i32, i32
  }
  func.func @transform_6(%arg0: i32) -> (i32, i32) {
    %c0_i32 = arith.constant 0 : i32
    %c0_i32_0 = arith.constant 0 : i32
    %c0_i32_1 = arith.constant 0 : i32
    return %c0_i32, %c0_i32_0 : i32, i32
  }
  func.func @transform_7(%arg0: i32) -> (i32, i32) {
    %c0_i32 = arith.constant 0 : i32
    %c0_i32_0 = arith.constant 0 : i32
    %c0_i32_1 = arith.constant 0 : i32
    return %c0_i32, %c0_i32_0 : i32, i32
  }
  func.func @transform_8(%arg0: i32) -> (i32, i32) {
    %c0_i32 = arith.constant 0 : i32
    %c0_i32_0 = arith.constant 0 : i32
    %c0_i32_1 = arith.constant 0 : i32
    return %c0_i32, %c0_i32_0 : i32, i32
  }
  func.func @transform_9(%arg0: i32) -> (i32, i32) {
    %c0_i32 = arith.constant 0 : i32
    %c0_i32_0 = arith.constant 0 : i32
    %c0_i32_1 = arith.constant 0 : i32
    return %c0_i32, %c0_i32_0 : i32, i32
  }
  func.func @transform_10(%arg0: i32) -> (i32, i32) {
    %c0_i32 = arith.constant 0 : i32
    %c0_i32_0 = arith.constant 0 : i32
    %c0_i32_1 = arith.constant 0 : i32
    return %c0_i32, %c0_i32_0 : i32, i32
  }
  func.func @transform_11(%arg0: i32) -> (i32, i32) {
    %c0_i32 = arith.constant 0 : i32
    %c0_i32_0 = arith.constant 0 : i32
    %c0_i32_1 = arith.constant 0 : i32
    return %c0_i32, %c0_i32_0 : i32, i32
  }
  func.func @transform_12(%arg0: i32) -> (i32, i32) {
    %c0_i32 = arith.constant 0 : i32
    %c0_i32_0 = arith.constant 0 : i32
    %c0_i32_1 = arith.constant 0 : i32
    return %c0_i32, %c0_i32_0 : i32, i32
  }
  func.func @transform_13(%arg0: i32) -> (i32, i32) {
    %c0_i32 = arith.constant 0 : i32
    %c0_i32_0 = arith.constant 0 : i32
    %c0_i32_1 = arith.constant 0 : i32
    return %c0_i32, %c0_i32_0 : i32, i32
  }
  func.func @transform_14(%arg0: i32) -> (i32, i32) {
    %c0_i32 = arith.constant 0 : i32
    %c0_i32_0 = arith.constant 0 : i32
    %c0_i32_1 = arith.constant 0 : i32
    return %c0_i32, %c0_i32_0 : i32, i32
  }
  func.func @transform_15(%arg0: i32) -> (i32, i32) {
    %c0_i32 = arith.constant 0 : i32
    %c0_i32_0 = arith.constant 0 : i32
    %c0_i32_1 = arith.constant 0 : i32
    return %c0_i32, %c0_i32_0 : i32, i32
  }
  func.func @transform_16(%arg0: i32) -> (i32, i32) {
    %c0_i32 = arith.constant 0 : i32
    %c0_i32_0 = arith.constant 0 : i32
    %c0_i32_1 = arith.constant 0 : i32
    return %c0_i32, %c0_i32_0 : i32, i32
  }
  func.func @transform_17(%arg0: i32) -> (i32, i32) {
    %c0_i32 = arith.constant 0 : i32
    %c0_i32_0 = arith.constant 0 : i32
    %c0_i32_1 = arith.constant 0 : i32
    return %c0_i32, %c0_i32_0 : i32, i32
  }
  func.func @transform_18(%arg0: i32) -> (i32, i32) {
    %c0_i32 = arith.constant 0 : i32
    %c0_i32_0 = arith.constant 0 : i32
    %c0_i32_1 = arith.constant 0 : i32
    return %c0_i32, %c0_i32_0 : i32, i32
  }
  func.func @transform_19(%arg0: i32) -> (i32, i32) {
    %c0_i32 = arith.constant 0 : i32
    %c0_i32_0 = arith.constant 0 : i32
    %c0_i32_1 = arith.constant 0 : i32
    return %c0_i32, %c0_i32_0 : i32, i32
  }
  func.func @transform_20(%arg0: i32) -> (i32, i32) {
    %c0_i32 = arith.constant 0 : i32
    %c0_i32_0 = arith.constant 0 : i32
    %c0_i32_1 = arith.constant 0 : i32
    return %c0_i32, %c0_i32_0 : i32, i32
  }
  func.func @transform_21(%arg0: i32) -> (i32, i32) {
    %c0_i32 = arith.constant 0 : i32
    %c0_i32_0 = arith.constant 0 : i32
    %c0_i32_1 = arith.constant 0 : i32
    return %c0_i32, %c0_i32_0 : i32, i32
  }
  func.func @transform_22(%arg0: i32) -> (i32, i32, i32) {
    %c0_i32 = arith.constant 0 : i32
    %c0_i32_0 = arith.constant 0 : i32
    %c0_i32_1 = arith.constant 0 : i32
    return %arg0, %c0_i32, %c0_i32_0 : i32, i32, i32
  }
}

</mosaic_0001>

<bundles_post_ra>
// kernel: tpu_custom_call.1
= control target key start
LH: loop header
LB: loop body
LE: loop exit
PB: predicated region body
PF: predicated region fallthrough
CT: control target
= control target key end

     0   :  { %s5269_s0 = inlined_call_operand.vmem [shape: f32[2,8,32], index: 0, kind: input, shape index: {}]   ;;  %s5270_s1 = inlined_call_operand.vmem [shape: bf16[2,16,32], index: 1, kind: input, shape index: {}]   ;;  %s5271_s2 = inlined_call_operand.vmem [shape: f32[1,32], index: 2, kind: input, shape index: {}]   ;;  %s5272_s3 = inlined_call_operand.vmem [shape: f32[1,32], index: 3, kind: input, shape index: {}]   ;;  %s5273_s4 = inlined_call_operand.vmem [shape: f32[1,32], index: 4, kind: input, shape index: {}]   ;;  %s5274_s5 = inlined_call_operand.hbm [shape: f32[1,32], index: 5, kind: input, shape index: {}]   ;;  %s5275_s6 = inlined_call_operand.hbm [shape: f32[1,32], index: 6, kind: input, shape index: {}]   ;;  %s5276_s7 = inlined_call_operand.hbm [shape: f32[1,32], index: 7, kind: input, shape index: {}]   ;;  %s5277_s8 = inlined_call_operand.vmem [shape: bf16[32,32], index: 8, kind: input, shape index: {}]   ;;  %s5278_s9 = inlined_call_operand.vmem [shape: bf16[32,32], index: 9, kind: input, shape index: {}]   ;;  %s5279_s10 = inlined_call_operand.vmem [shape: bf16[32,32], index: 10, kind: input, shape index: {}]   ;;  %s5280_s11 = inlined_call_operand.hbm [shape: bf16[32,32], index: 11, kind: input, shape index: {}]   ;;  %s5281_s12 = inlined_call_operand.hbm [shape: f32[1,32], index: 12, kind: input, shape index: {}]   ;;  %s5282_s13 = inlined_call_operand.hbm [shape: bf16[32,32], index: 13, kind: input, shape index: {}]   ;;  %s5283_s14 = inlined_call_operand.hbm [shape: bf16[32,32], index: 14, kind: input, shape index: {}]   ;;  %s5284_s15 = inlined_call_operand.hbm [shape: bf16[32,32], index: 15, kind: input, shape index: {}]   ;;  %s5285_s16 = inlined_call_operand.hbm [shape: bf16[32,32], index: 16, kind: input, shape index: {}]   ;;  %s5286_s17 = inlined_call_operand.hbm [shape: f32[1,32], index: 17, kind: input, shape index: {}]   ;;  %s5287_s18 = inlined_call_operand.hbm [shape: bf16[32,128], index: 18, kind: input, shape index: {}]   ;;  %s5288_s19 = inlined_call_operand.hbm [shape: f32[1,128], index: 19, kind: input, shape index: {}]   ;;  %s5289_s20 = inlined_call_operand.vmem [shape: bf16[128,32], index: 20, kind: input, shape index: {}]   ;;  %s5290_s21 = inlined_call_operand.hbm [shape: f32[1,32], index: 21, kind: input, shape index: {}]   ;;  %s5291_s22 = inlined_call_operand.hbm [shape: f32[2,8,32], index: 22, kind: output, shape index: {}]  }
   0x1   :  { %5301 = sst [smem:[#allocation39_spill]] %s5269_s0 }
   0x2   :  { %5302 = sst [smem:[#allocation40_spill]] %s5270_s1 }
   0x3   :  { %5303 = sst [smem:[#allocation41_spill]] %s5271_s2 }
   0x4   :  { %5304 = sst [smem:[#allocation42_spill]] %s5272_s3 }
   0x5   :  { %5305 = sst [smem:[#allocation43_spill]] %s5273_s4 }
   0x6   :  { %5306 = sst [smem:[#allocation44_spill]] %s5274_s5 }
   0x7   :  { %5307 = sst [smem:[#allocation45_spill]] %s5275_s6 }
   0x8   :  { %5308 = sst [smem:[#allocation46_spill]] %s5280_s11 }
   0x9   :  { %5309 = sst [smem:[#allocation47_spill]] %s5282_s13 }
   0xa   :  { %5310 = sst [smem:[#allocation48_spill]] %s5284_s15 }
   0xb   :  { %5311 = sst [smem:[#allocation49_spill]] %s5286_s17 }
   0xc   :  { %5312 = sst [smem:[#allocation50_spill]] %s5291_s22 }
   0xd   :  { %27 = vsyncpa [#allocation3], 0 }
   0xe   :  { %28 = vsyncpa [#allocation6], 0 }
   0xf   :  { %29 = vsyncpa [#allocation9], 0 }
  0x10   :  { %30 = vsyncpa [#allocation12], 0 }
  0x11   :  { %31 = vsyncpa [#allocation15], 0 }
  0x12   :  { %32 = vsyncpa [#allocation18], 0 }
  0x13   :  { %33 = vsyncpa [#allocation21], 0 }
  0x14   :  { %34 = vsyncpa [#allocation4], 0 }
  0x15   :  { %36 = vsyncpa [#allocation4 + $0x1], 0  ;;  %s4427_s3 = smov 0   ;;  %s4429_s28 = smov 0  }
  0x16   :  { %s4431_s29 = smov 0   ;;  %s4433_s30 = smov 0  }
  0x17 LB: > { %5313 = sst [smem:[#allocation32_spill]] %s4274_s3  ;;  %s4448_s4 = sadd.s32 4294967295, %s4286_s30   ;;  %s4286_s30 = sphi %s4433_s30, %s5341_s30   ;;  %s4282_s29 = sphi %s4431_s29, %s5343_s29   ;;  %s4278_s28 = sphi %s4429_s28, %s5345_s28   ;;  %s4274_s3 = sphi %s4427_s3, %s5344_s3  }
  0x18   : > { %5314 = sst [smem:[#allocation33_spill]] %s4282_s29  ;;  %s3342_s0 = sadd.s32 4294967294, %s4286_s30  }
  0x19   : > { %5315 = sst [smem:[#allocation34_spill]] %s4286_s30  ;;  %s4452_s23 = sadd.s32 1, %s4286_s30  }
  0x1a   : > { %5316 = sst [smem:[#allocation35_spill]] %s4452_s23  ;;  %s521_s1 = sadd.s32 1, %s4282_s29 }
  0x1b   : > { %s518_s5 = ssub.s32 %s4286_s30, %s4452_s23  ;;  %p531_p0 = scmp.ne.s32.totalorder %s4282_s29, %s4278_s28 }
  0x1c   : > { %p519_p1 = scmp.eq.s32.totalorder %s518_s5, 0  ;;  %p532_p2 = scmp.eq.s32.totalorder %s4448_s4, 1 }
  0x1d   : > { %p537_p3 = scmp.ne.s32.totalorder %s4278_s28, %s4274_s3  ;;  %p538_p4 = scmp.eq.s32.totalorder %s3342_s0, 1 }
  0x1e   : > { %s4463_s24 = scalar_select %p519_p1, %s4282_s29, %s521_s1  }
  0x1f   : > { %p4465_p5 = por %p532_p2, %p531_p0  ;;  %p4469_p6 = por %p538_p4, %p537_p3 }
  0x20   : > { %5317 = sst [smem:[#allocation36_spill]] %s4463_s24  ;;  %p3343_p7 = scmp.ge.s32.totalorder %s4286_s30, 1 }
  0x21   : > { %s5318_s6 = scalar_select %p4465_p5, 1, 0 }
  0x22   : > { %s5320_s25 = scalar_select %p4469_p6, 1, 0 }
  0x23   : > { %5319 = sst [smem:[#allocation37_spill]] %s5318_s6  ;;  %p545_p8 = scmp.lt.s32.totalorder %s4286_s30, 3 }
  0x24   : > { %5321 = sst [smem:[#allocation38_spill]] %s5320_s25  ;;  %p3639_p9 = scmp.eq.s32.totalorder %s4448_s4, 0 }
  0x25   : > { %p4476_p10 = pnand %p3343_p7, %p545_p8  ;;  %s5323_s0 = sld [smem:[#allocation45_spill]] }
  0x26   : > { %s4288_s5 = smov [#allocation5]   ;;  %s5324_s11 = sld [smem:[#allocation46_spill]] }
  0x27   : > { %p3595_p11 = pneg %p4476_p10  ;;  %s580_s24 = sshll.u32 %s4288_s5, 4  ;;  %s581_s24 = int_to_ptr.vmem [resolvable:$true] %s580_s24 }
  0x28   : > { %s4289_s2 = smov [#allocation8]   ;;  %s4291_s5 = smov 4  }
  0x29   : > { %p4490_p12 = pnand %p3639_p9, %p3595_p11  ;;  %s612_s27 = sshll.u32 %s4289_s2, 4  ;;  %s613_s27 = int_to_ptr.vmem [resolvable:$true] %s612_s27 }
  0x2a   : > { %s5326_s13 = sld [smem:[#allocation47_spill]]  ;;  %s4292_s30 = smov [#allocation11]  }
  0x2b   : > { %s578_s1 = sshll.u32 %s5323_s0, 4  ;;  %s4290_s0 = smov 64   ;;  %s579_s1 = int_to_ptr.hbm [resolvable:$true] %s578_s1 }
  0x2c   : > { %s610_s25 = sshll.u32 %s5324_s11, 4  ;;  %s638_s6 = sshll.u32 %s4292_s30, 4  ;;  %s611_s25 = int_to_ptr.hbm [resolvable:$true] %s610_s25  ;;  %s639_s6 = int_to_ptr.vmem [resolvable:$true] %s638_s6 }
  0x2d   : > { %3601 = dma.hbm_to_vmem [thread:$0]  (!%p4490_p12), %s579_s1, 16, %s581_s24, [#allocation6]  }
  0x2e   : > { %3607 = dma.hbm_to_vmem [thread:$0]  (!%p4490_p12), %s611_s25, 256, %s613_s27, [#allocation9], %s4290_s0, %s4290_s0, %s4291_s5  }
  0x2f   : > { %s5327_s15 = sld [smem:[#allocation48_spill]]  ;;  %s4293_s25 = smov [#allocation14]  }
  0x30   : > { %s636_s11 = sshll.u32 %s5326_s13, 4  ;;  %s666_s27 = sshll.u32 %s4293_s25, 4  ;;  %s637_s11 = int_to_ptr.hbm [resolvable:$true] %s636_s11  ;;  %s667_s27 = int_to_ptr.vmem [resolvable:$true] %s666_s27 }
  0x31   : > { %3613 = dma.hbm_to_vmem [thread:$0]  (!%p4490_p12), %s637_s11, 256, %s639_s6, [#allocation12], %s4290_s0, %s4290_s0, %s4291_s5  }
  0x32   : > { %s5328_s17 = sld [smem:[#allocation49_spill]]  ;;  %s719_s24 = sshll.u32 %s5288_s19, 4  ;;  %s720_s24 = int_to_ptr.hbm [resolvable:$true] %s719_s24 }
  0x33   : > { %s4294_s11 = smov [#allocation17]   ;;  %s4295_s22 = smov [#allocation20]  }
  0x34   : > { %s695_s6 = sshll.u32 %s4294_s11, 4  ;;  %s721_s25 = sshll.u32 %s4295_s22, 4  ;;  %s696_s6 = int_to_ptr.vmem [resolvable:$true] %s695_s6  ;;  %s722_s25 = int_to_ptr.vmem [resolvable:$true] %s721_s25 }
  0x35   : > { %s664_s1 = sshll.u32 %s5327_s15, 4  ;;  %s5329_s15 = sld [smem:[#allocation44_spill]]  ;;  %s665_s1 = int_to_ptr.hbm [resolvable:$true] %s664_s1 }
  0x36   : > { %3619 = dma.hbm_to_vmem [thread:$0]  (!%p4490_p12), %s665_s1, 256, %s667_s27, [#allocation15], %s4290_s0, %s4290_s0, %s4291_s5  }
  0x37   : > { %3631 = dma.hbm_to_vmem [thread:$0]  (!%p4490_p12), %s720_s24, 16, %s722_s25, [#allocation21]  }
  0x38   : > { %s693_s23 = sshll.u32 %s5328_s17, 4  ;;  %s590_s30 = sshll.u32 %s5276_s7, 4  ;;  %s694_s23 = int_to_ptr.hbm [resolvable:$true] %s693_s23  ;;  %s591_s30 = int_to_ptr.hbm [resolvable:$true] %s590_s30 }
  0x39   : > { %3625 = dma.hbm_to_vmem [thread:$0]  (!%p4490_p12), %s694_s23, 16, %s696_s6, [#allocation18]  }
  0x3a   : > { %s4296_s2 = smov [#allocation2]   ;;  %s4297_s23 = smov [#allocation7]  }
  0x3b   : > { %s566_s17 = sshll.u32 %s5329_s15, 4  ;;  %s568_s11 = sshll.u32 %s4296_s2, 4  ;;  %s567_s17 = int_to_ptr.hbm [resolvable:$true] %s566_s17  ;;  %s569_s11 = int_to_ptr.vmem [resolvable:$true] %s568_s11 }
  0x3c   : > { %3598 = dma.hbm_to_vmem [thread:$0]  (!%p4490_p12), %s567_s17, 16, %s569_s11, [#allocation3]  }
  0x3d   : > { %s592_s6 = sshll.u32 %s4297_s23, 4  ;;  %s625_s15 = sshll.u32 %s5281_s12, 4  ;;  %s593_s6 = int_to_ptr.vmem [resolvable:$true] %s592_s6  ;;  %s626_s15 = int_to_ptr.hbm [resolvable:$true] %s625_s15 }
  0x3e   : > { %3604 = dma.hbm_to_vmem [thread:$0]  (!%p4490_p12), %s591_s30, 16, %s593_s6, [#allocation6]  }
  0x3f   : > { %s650_s29 = sshll.u32 %s5283_s14, 4  ;;  %s4298_s1 = smov [#allocation10]   ;;  %s651_s29 = int_to_ptr.hbm [resolvable:$true] %s650_s29 }
  0x40   : > { %s627_s27 = sshll.u32 %s4298_s1, 4  ;;  %s4299_s17 = smov [#allocation13]   ;;  %s628_s27 = int_to_ptr.vmem [resolvable:$true] %s627_s27 }
  0x41   : > { %3610 = dma.hbm_to_vmem [thread:$0]  (!%p4490_p12), %s626_s15, 16, %s628_s27, [#allocation9]  }
  0x42   : > { %s652_s2 = sshll.u32 %s4299_s17, 4  ;;  %s678_s13 = sshll.u32 %s5285_s16, 4  ;;  %s653_s2 = int_to_ptr.vmem [resolvable:$true] %s652_s2  ;;  %s679_s13 = int_to_ptr.hbm [resolvable:$true] %s678_s13 }
  0x43   : > { %3616 = dma.hbm_to_vmem [thread:$0]  (!%p4490_p12), %s651_s29, 256, %s653_s2, [#allocation12], %s4290_s0, %s4290_s0, %s4291_s5  }
  0x44   : > { %s704_s22 = sshll.u32 %s5287_s18, 4  ;;  %s4300_s15 = smov [#allocation16]   ;;  %s705_s22 = int_to_ptr.hbm [resolvable:$true] %s704_s22 }
  0x45   : > { %s680_s24 = sshll.u32 %s4300_s15, 4  ;;  %s4301_s25 = smov [#allocation19]   ;;  %s681_s24 = int_to_ptr.vmem [resolvable:$true] %s680_s24 }
  0x46   : > { %3622 = dma.hbm_to_vmem [thread:$0]  (!%p4490_p12), %s679_s13, 256, %s681_s24, [#allocation15], %s4290_s0, %s4290_s0, %s4291_s5  }
  0x47   : > { %s706_s1 = sshll.u32 %s4301_s25, 4  ;;  %s734_s29 = sshll.u32 %s5290_s21, 4  ;;  %s707_s1 = int_to_ptr.vmem [resolvable:$true] %s706_s1  ;;  %s735_s29 = int_to_ptr.hbm [resolvable:$true] %s734_s29 }
  0x48   : > { %3628 = dma.hbm_to_vmem [thread:$0]  (!%p4490_p12), %s705_s22, 256, %s707_s1, [#allocation18], %s4290_s0, %s4290_s0, %s4291_s5  }
  0x49   : > { %s4302_s2 = smov [#allocation22]   ;;  %764 = sbr.rel (%p4476_p10) target bundleno = 3398 (0xd46), region = 108 }
  0x4a   : > { %s736_s11 = sshll.u32 %s4302_s2, 4  ;;  %s737_s11 = int_to_ptr.vmem [resolvable:$true] %s736_s11 }
  0x4b   : > { %3634 = dma.hbm_to_vmem [thread:$0]  (!%p4490_p12), %s735_s29, 16, %s737_s11, [#allocation21]  }
  0x4e   : > { %4241 = dma.done.wait (%p3639_p9), [#allocation3], 16  }
  0x4f   : > { %4243 = vsyncadd (%p3639_p9), [#allocation3], 4294967280 }
  0x50   : > { %4245 = dma.done.wait (%p3639_p9), [#allocation6], 32  }
  0x51   : > { %4247 = vsyncadd (%p3639_p9), [#allocation6], 4294967264 }
  0x52   : > { %4249 = dma.done.wait (%p3639_p9), [#allocation9], 272  }
  0x53   : > { %4251 = vsyncadd (%p3639_p9), [#allocation9], 4294967024 }
  0x54   : > { %4253 = dma.done.wait (%p3639_p9), [#allocation12], 512  }
  0x55   : > { %4255 = vsyncadd (%p3639_p9), [#allocation12], 4294966784 }
  0x56   : > { %4257 = dma.done.wait (%p3639_p9), [#allocation15], 512  }
  0x57   : > { %4259 = vsyncadd (%p3639_p9), [#allocation15], 4294966784 }
  0x58   : > { %4261 = dma.done.wait (%p3639_p9), [#allocation18], 272  }
  0x59   : > { %4263 = vsyncadd (%p3639_p9), [#allocation18], 4294967024 }
  0x5a   : > { %4265 = dma.done.wait (%p3639_p9), [#allocation21], 32  }
  0x5b   : > { %4267 = vsyncadd (%p3639_p9), [#allocation21], 4294967264  ;;  %p891_p13 = scmp.lt.s32.totalorder %s4448_s4, 1  ;;  %s5330_s23 = sld [smem:[#allocation39_spill]]  ;;  %vm911_vm0 = vcmask 261120   ;;  %v4303_v2 = vmov 32.0  }
  0x5c   : > { %3762 = vrcp.f32 %v4303_v2  ;;  %v3516_v14 = vld [vmem:[%s5277_s8 + $0x8] sm:$0xff]  ;;  %v3515_v16 = vld [vmem:[%s5277_s8] sm:$0xff]  ;;  %s5332_s6 = sld [smem:[#allocation42_spill]]  ;;  %s4304_s22 = smov 112   ;;  %v4307_v44 = vmov 1983009808  }
  0x5d   : > { %s4603_s3 = scalar_select %p891_p13, %s4448_s4, 1  ;;  %v3518_v15 = vld [vmem:[%s5278_s9 + $0x8] sm:$0xff]  ;;  %975 = vmatpush.bf16.msra.mxu0 %v3516_v14  ;;  %v3517_v17 = vld [vmem:[%s5278_s9] sm:$0xff]  ;;  %v1057_v45 = vunpack.c.l.s4 %v4307_v44  ;;  %vm1052_vm5 = vcmask 1047556   ;;  %v4308_v53 = vmov 1934713408  }
  0x5e   : > { %1005 = vmatpush.bf16.msra.mxu2 %v3518_v15  ;;  %v3520_v18 = vld [vmem:[%s5279_s10 + $0x8] sm:$0xff]  ;;  %v3519_v21 = vld [vmem:[%s5279_s10] sm:$0xff]  ;;  %s4305_s15 = smov 104   ;;  %s4306_s24 = smov 120   ;;  %v1081_v54 = vunpack.c.l.s4 %v4308_v53  ;;  %vm1414_vm6 = vcmask 64512   ;;  %vm1548_vm8 = vcmask 1043456  }
  0x5f   : > { %s3373_s26 = sshll.u32 %s4603_s3, 3  ;;  %v4657_v50 = vunpack.c.0.s8 %v1057_v45  ;;  %s4309_s25 = smov 24   ;;  %vm1745_vm9 = vcmask 130048   ;;  %vm1747_vm10 = vcmask 195584  }
  0x60   : > { %v4662_v61 = vunpack.c.0.s8 %v1081_v54  ;;  %s4310_s1 = smov 16   ;;  %s4311_s27 = smov 8  }
  0x61   : > { %s894_s13 = scalar_lea.vmem %s5330_s23, %s3373_s26  ;;  %976 = vmatpush.bf16.msra.mxu0 %v3515_v16  ;;  %s5331_s23 = sld [smem:[#allocation41_spill]] }
  0x62   : > { %v4611_v0 = vld [vmem:[%s894_s13] sm:$0xff]  ;;  %v3763_v3 = vpop.eup %3762  ;;  %1006 = vmatpush.bf16.msra.mxu2 %v3517_v17  ;;  %s5333_s2 = sld [smem:[#allocation40_spill]]  ;;  %s3510_s5 = sshll.u32 %s4448_s4, 3 }
  0x63   : > { %v912_v1 = vsel %vm911_vm0, %v4611_v0, 0.0  ;;  %v916_v4 = vmul.f32 32.0, %v3763_v3  ;;  %vm920_vm1 = vweird.f32 %v3763_v3  ;;  %v3753_v32 = vld [vmem:[%s5332_s6] ss:$0 sm:$0xff]  ;;  %s5334_s0 = sld [smem:[#allocation43_spill]] }
  0x64   : > { %913 = vadd.xlane.f32.xlu0 %v912_v1  ;;  %s5335_s30 = sld [smem:[#allocation50_spill]] }
  0x65   : > { %v917_v5 = vsub.f32 1.0, %v916_v4 }
  0x66   : > { %1034 = vmatpush.bf16.msrb.mxu2 %v3520_v18 }
  0x67   : > { %v918_v6 = vmul.f32 %v3763_v3, %v917_v5  ;;  %v3752_v29 = vld [vmem:[%s5331_s23] ss:$0 sm:$0xff] }
  0x68   : > { %s899_s11 = scalar_lea.vmem %s5333_s2, %s3373_s26  ;;  %s888_s26 = sand.u32 1, %s4278_s28  }
  0x69   : > { %v919_v7 = vadd.f32 %v3763_v3, %v918_v6 }
  0x6a   : > { %1035 = vmatpush.bf16.msrb.mxu2 %v3519_v21  ;;  %s5336_s6 = smov %s5335_s30 }
  0x6b   : > { %v4615_v8 = vsel %vm920_vm1, %v3763_v3, %v919_v7 }
  0xd7   : > { %v914_v9 = vpop.xlane.xlu0 %913 }
  0xd8   : > { %v922_v10 = vmul.f32 %v4615_v8, %v914_v9 }
  0xda   : > { %v923_v11 = vsub.f32 %v4611_v0, %v922_v10 }
  0xdc   : > { %v924_v12 = vmul.f32 %v923_v11, %v923_v11 }
  0xde   : > { %v925_v13 = vsel %vm911_vm0, %v924_v12, 0.0 }
  0xdf   : > { %926 = vadd.xlane.f32.xlu0 %v925_v13 }
 0x152   : > { %v927_v19 = vpop.xlane.xlu0 %926 }
 0x153   : > { %v928_v20 = vmul.f32 %v927_v19, %v4615_v8 }
 0x155   : > { %v929_v22 = vadd.f32 1e-05, %v928_v20 }
 0x157   : > { %3764 = vrsqrt.f32 %v929_v22  ;;  %vm936_vm3 = vweird.f32 %v929_v22 }
 0x15d   : > { %v3765_v23 = vpop.eup %3764 }
 0x15e   : > { %v931_v24 = vmul.f32 %v3765_v23, %v929_v22  ;;  %vm937_vm2 = vweird.f32 %v3765_v23 }
 0x15f   : > { %vm938_vm4 = vmor %vm936_vm3, %vm937_vm2 }
 0x160   : > { %v932_v25 = vmul.f32 %v3765_v23, %v931_v24 }
 0x162   : > { %v933_v26 = vmul.f32 0.5, %v932_v25 }
 0x164   : > { %v934_v27 = vsub.f32 1.5, %v933_v26 }
 0x166   : > { %v935_v28 = vmul.f32 %v3765_v23, %v934_v27 }
 0x168   : > { %v939_v30 = vsel %vm938_vm4, %v3765_v23, %v935_v28 }
 0x169   : > { %v940_v31 = vmul.f32 %v939_v30, %v923_v11 }
 0x16b   : > { %v944_v33 = vmul.f32 %v3752_v29, %v940_v31 }
 0x16d   : > { %v948_v34 = vadd.f32 %v3753_v32, %v944_v33 }
 0x16f   : > { %v949_v35 = vpack.c.bf16 %v948_v34, %v948_v34 }
 0x171   : > { %3384 = vmatmul.msk.bf16.vlgmr.msra.gmra.mxu0 %vm911_vm0, %v949_v35  ;;  %3393 = vmatmul.msk.bf16.vlgmr.msra.gmra.mxu2 %vm911_vm0, %v949_v35 }
 0x181   : > { %3402 = vmatmul.msk.bf16.vlgmr.msrb.gmra.mxu2 %vm911_vm0, %v949_v35 }
 0x1ee   : > { %v978_v36 = vpop.f32.mrf.mxu0 }
 0x1ef   : > { %v982_v37 = vmul.f32 0.35355338, %v978_v36 }
 0x1f1   : > { %1045 = vrot.lane.b32.xlu0 %v982_v37, %s4304_s22  ;;  %v1054_v58 = vrot.slane %v982_v37, 4 }
 0x1f4   : > { %v1008_v38 = vpop.f32.mrf.mxu2 }
 0x1f5   : > { %1173 = vrot.lane.b32.xlu2 %v1008_v38, %s4305_s15  ;;  %1167 = vrot.lane.b32.xlu1 %v1008_v38, %s4306_s24  ;;  %v1178_v57 = vrot.slane %v1008_v38, 4 }
 0x1f6   : > { %v980_v39 = vpop.f32.mrf.mxu0 }
 0x1fc   : > { %v1010_v40 = vpop.f32.mrf.mxu2 }
 0x1fd   : > { %1170 = vrot.lane.b32.xlu1 %v1008_v38, %s4304_s22  ;;  %1042 = vrot.lane.b32.xlu2 %v982_v37, %s4306_s24 }
 0x204   : > { %v4653_v41 = vpop.f32.mrf.mxu2 }
 0x205   : > { %1048 = vrot.lane.b32.xlu1 %v982_v37, %s4305_s15 }
 0x20c   : > { %v1039_v42 = vpop.f32.mrf.mxu2 }
 0x24f   : > { %v1174_v43 = vpop.permute.xlu2 %1173 }
 0x250   : > { %v1188_v48 = vrot.slane %v1174_v43, 4 }
 0x257   : > { %v1043_v11 = vpop.permute.xlu2 %1042 }
 0x258   : > { %v1066_v21 = vrot.slane %v1043_v11, 4 }
 0x263   : > { %v1046_v51 = vpop.permute.xlu0 %1045 }
 0x264   : > { %v1051_v56 = vrot.slane %v1046_v51, 4  ;;  %v1055_v1 = vsel %vm1052_vm5, %v1046_v51, %v1054_v58 }
 0x265   : > { %v1063_v12 = vperm.slane %v1055_v1, %v4657_v50 }
 0x266   : > { %v1053_v4 = vsel %vm1052_vm5, %v1051_v56, %v982_v37 }
 0x267   : > { %v1168_v46 = vpop.permute.xlu1 %1167  ;;  %v1059_v14 = vperm.slane %v1053_v4, %v4657_v50  ;;  %v1090_v24 = vrot.slane %v1063_v12, 4 }
 0x268   : > { %v1190_v47 = vrot.slane %v1168_v46, 4  ;;  %v1189_v52 = vsel %vm1052_vm5, %v1188_v48, %v1168_v46 }
 0x269   : > { %v1195_v59 = vperm.slane %v1189_v52, %v4657_v50  ;;  %v1078_v28 = vrot.slane %v1059_v14, 4 }
 0x26a   : > { %v1191_v49 = vsel %vm1052_vm5, %v1174_v43, %v1190_v47 }
 0x26b   : > { %v1199_v55 = vperm.slane %v1191_v49, %v4657_v50  ;;  %v1200_v6 = vrot.slane %v1195_v59, 4 }
 0x26d   : > { %v1212_v2 = vrot.slane %v1199_v55, 4 }
 0x26f   : > { %v1171_v60 = vpop.permute.xlu1 %1170 }
 0x270   : > { %v1176_v62 = vrot.slane %v1171_v60, 4  ;;  %v1179_v63 = vsel %vm1052_vm5, %v1171_v60, %v1178_v57 }
 0x271   : > { %v1187_v3 = vperm.slane %v1179_v63, %v4657_v50 }
 0x272   : > { %v1177_v5 = vsel %vm1052_vm5, %v1176_v62, %v1008_v38 }
 0x273   : > { %v1183_v7 = vperm.slane %v1177_v5, %v4657_v50  ;;  %v1213_v9 = vsel %vm1052_vm5, %v1212_v2, %v1187_v3  ;;  %v1214_v10 = vrot.slane %v1187_v3, 4 }
 0x274   : > { %v1219_v13 = vperm.slane %v1213_v9, %v4662_v61 }
 0x275   : > { %v1201_v15 = vsel %vm1052_vm5, %v1200_v6, %v1183_v7  ;;  %v1202_v16 = vrot.slane %v1183_v7, 4  ;;  %v1215_v17 = vsel %vm1052_vm5, %v1199_v55, %v1214_v10 }
 0x276   : > { %v1207_v18 = vperm.slane %v1201_v15, %v4662_v61  ;;  %v1223_v19 = vperm.slane %v1215_v17, %v4662_v61  ;;  %v1228_v20 = vrot.slane %v1219_v13, 4 }
 0x277   : > { %v1203_v22 = vsel %vm1052_vm5, %v1195_v59, %v1202_v16  ;;  %v1049_v23 = vpop.permute.xlu1 %1048 }
 0x278   : > { %v1211_v25 = vperm.slane %v1203_v22, %v4662_v61  ;;  %v1224_v26 = vrot.slane %v1207_v18, 4  ;;  %v1230_v27 = vrot.slane %v1223_v19, 4  ;;  %v1229_v29 = vsel %vm1052_vm5, 0.0, %v1228_v20 }
 0x279   : > { %v1064_v30 = vrot.slane %v1049_v23, 4  ;;  %v1067_v31 = vsel %vm1052_vm5, %v1049_v23, %v1066_v21 }
 0x27a   : > { %v1226_v32 = vrot.slane %v1211_v25, 4  ;;  %v1231_v33 = vsel %vm1052_vm5, 0.0, %v1230_v27  ;;  %v1243_v34 = vsel %vm1052_vm5, %v1230_v27, %v1219_v13  ;;  %v1075_v35 = vperm.slane %v1067_v31, %v4657_v50 }
 0x27b   : > { %v1247_v36 = vperm.slane %v1243_v34, %v4657_v50  ;;  %v1248_v37 = vrot.slane %v1231_v33, 4  ;;  %v1065_v38 = vsel %vm1052_vm5, %v1064_v30, %v1043_v11  ;;  %v1225_v39 = vsel %vm1052_vm5, 0.0, %v1224_v26 }
 0x27c   : > { %v1227_v40 = vsel %vm1052_vm5, 0.0, %v1226_v32  ;;  %v1071_v42 = vperm.slane %v1065_v38, %v4657_v50  ;;  %v1088_v43 = vrot.slane %v1075_v35, 4  ;;  %v1091_v44 = vsel %vm1052_vm5, %v1075_v35, %v1090_v24 }
 0x27d   : > { %v1249_v45 = vsel %vm1052_vm5, %v1248_v37, %v1229_v29  ;;  %v1099_v46 = vperm.slane %v1091_v44, %v4662_v61  ;;  %v1232_v47 = vsel %vm1052_vm5, %v1226_v32, %v1207_v18  ;;  %v1237_v48 = vrot.slane %v1227_v40, 4 }
 0x27e   : > { %v1076_v49 = vrot.slane %v1071_v42, 4  ;;  %v1079_v51 = vsel %vm1052_vm5, %v1071_v42, %v1078_v28  ;;  %v1089_v52 = vsel %vm1052_vm5, %v1088_v43, %v1063_v12  ;;  %v1236_v53 = vperm.slane %v1232_v47, %v4657_v50 }
 0x27f   : > { %v1087_v54 = vperm.slane %v1079_v51, %v4662_v61  ;;  %v1095_v55 = vperm.slane %v1089_v52, %v4662_v61  ;;  %v1106_v56 = vrot.slane %v1099_v46, 4  ;;  %v1238_v57 = vsel %vm1052_vm5, %v1237_v48, %v1225_v39 }
 0x280   : > { %v1077_v58 = vsel %vm1052_vm5, %v1076_v49, %v1059_v14  ;;  %v1242_v59 = vperm.slane %v1238_v57, %v4657_v50  ;;  %v1253_v60 = vperm.slane %v1249_v45, %v4657_v50  ;;  %v1256_v62 = vrot.slane %v1236_v53, 4 }
 0x281   : > { %v1083_v63 = vperm.slane %v1077_v58, %v4662_v61  ;;  %v1102_v1 = vrot.slane %v1087_v54, 4  ;;  %v1104_v2 = vrot.slane %v1095_v55, 4  ;;  %v1107_v3 = vsel %vm1052_vm5, 0.0, %v1106_v56 }
 0x282   : > { %v1119_v4 = vsel %vm1052_vm5, %v1106_v56, %v1095_v55  ;;  %v1124_v5 = vrot.slane %v1107_v3, 4  ;;  %v1257_v6 = vsel %vm1052_vm5, %v1242_v59, %v1256_v62  ;;  %v1268_v7 = vrot.slane %v1247_v36, 4 }
 0x283   : > { %v1100_v9 = vrot.slane %v1083_v63, 4  ;;  %v1103_v10 = vsel %vm1052_vm5, 0.0, %v1102_v1  ;;  %v1105_v11 = vsel %vm1052_vm5, 0.0, %v1104_v2  ;;  %v1123_v12 = vperm.slane %v1119_v4, %v4657_v50 }
 0x284   : > { %v1113_v13 = vrot.slane %v1103_v10, 4  ;;  %v1125_v14 = vsel %vm1052_vm5, %v1124_v5, %v1105_v11  ;;  %v1265_v15 = vperm.slane %v1257_v6, %v4662_v61  ;;  %v1269_v16 = vsel %vm1052_vm5, %v1253_v60, %v1268_v7 }
 0x285   : > { %v1277_v17 = vperm.slane %v1269_v16, %v4662_v61  ;;  %v1254_v18 = vrot.slane %v1242_v59, 4  ;;  %v1266_v19 = vrot.slane %v1253_v60, 4  ;;  %v1101_v20 = vsel %vm1052_vm5, 0.0, %v1100_v9 }
 0x286   : > { %v1284_v21 = vrot.slane %v1265_v15, 4  ;;  %v1108_v22 = vsel %vm1052_vm5, %v1102_v1, %v1083_v63  ;;  %v1114_v23 = vsel %vm1052_vm5, %v1113_v13, %v1101_v20  ;;  %v1129_v24 = vperm.slane %v1125_v14, %v4657_v50 }
 0x287   : > { %v1282_v25 = vrot.slane %v1277_v17, 4  ;;  %v1255_v26 = vsel %vm1052_vm5, %v1254_v18, %v1236_v53  ;;  %v1267_v27 = vsel %vm1052_vm5, %v1266_v19, %v1247_v36  ;;  %v1112_v28 = vperm.slane %v1108_v22, %v4657_v50 }
 0x288   : > { %v1261_v29 = vperm.slane %v1255_v26, %v4662_v61  ;;  %v1273_v30 = vperm.slane %v1267_v27, %v4662_v61  ;;  %v1285_v31 = vsel %vm1052_vm5, %v1277_v17, %v1284_v21  ;;  %v1118_v32 = vperm.slane %v1114_v23, %v4657_v50 }
 0x289   : > { %v1283_v33 = vsel %vm1052_vm5, %v1282_v25, %v1265_v15  ;;  %v1289_v34 = vpack.c.bf16 %v1285_v31, %v1285_v31  ;;  %v1132_v35 = vrot.slane %v1112_v28, 4  ;;  %v1144_v37 = vrot.slane %v1123_v12, 4 }
 0x28a   : > { %v1288_v38 = vpack.c.bf16 %v1283_v33, %v1283_v33  ;;  %v1278_v39 = vrot.slane %v1273_v30, 4  ;;  %v1280_v40 = vrot.slane %v1261_v29, 4  ;;  %v1130_v42 = vrot.slane %v1118_v32, 4 }
 0x28b   : > { %v1476_v36 = vsel %vm1414_vm6, %v1289_v34, 0  ;;  %v1133_v43 = vsel %vm1052_vm5, %v1118_v32, %v1132_v35  ;;  %v1145_v44 = vsel %vm1052_vm5, %v1129_v24, %v1144_v37  ;;  %v1142_v45 = vrot.slane %v1129_v24, 4 }
 0x28c   : > { %v1457_v46 = vsel %vm1414_vm6, %v1288_v38, 0  ;;  %v1279_v47 = vsel %vm1052_vm5, %v1278_v39, %v1261_v29  ;;  %1485 = vmatpush.bf16.xpose.msra.mxu2 %v1476_v36  ;;  %v1281_v48 = vsel %vm1052_vm5, %v1273_v30, %v1280_v40  ;;  %v1141_v49 = vperm.slane %v1133_v43, %v4662_v61 }
 0x28d   : > { %1466 = vmatpush.bf16.xpose.msra.mxu1 %v1457_v46  ;;  %v1286_v51 = vpack.c.bf16 %v1279_v47, %v1279_v47  ;;  %v1287_v52 = vpack.c.bf16 %v1281_v48, %v1281_v48  ;;  %v1153_v53 = vperm.slane %v1145_v44, %v4662_v61  ;;  %v1131_v54 = vsel %vm1052_vm5, %v1130_v42, %v1112_v28 }
 0x28e   : > { %v1160_v55 = vrot.slane %v1141_v49, 4  ;;  %v1137_v56 = vperm.slane %v1131_v54, %v4662_v61  ;;  %v1143_v57 = vsel %vm1052_vm5, %v1142_v45, %v1123_v12  ;;  %v904_v11 = vlaneseq }
 0x28f   : > { %v1419_v58 = vsel %vm1414_vm6, %v1286_v51, 0  ;;  %v1438_v59 = vsel %vm1414_vm6, %v1287_v52, 0  ;;  %v1158_v60 = vrot.slane %v1153_v53, 4  ;;  %v1149_v62 = vperm.slane %v1143_v57, %v4662_v61 }
 0x290   : > { %1428 = vmatpush.bf16.xpose.msra.mxu3 %v1419_v58  ;;  %1447 = vmatpush.bf16.xpose.msrb.mxu0 %v1438_v59  ;;  %v1156_v63 = vrot.slane %v1137_v56, 4  ;;  %v1161_v1 = vsel %vm1052_vm5, %v1153_v53, %v1160_v55  ;;  %v905_v12 = vshrl.u32 %v904_v11, 7  ;;  %v907_v13 = vand.u32 127, %v904_v11 }
 0x291   : > { %v1159_v2 = vsel %vm1052_vm5, %v1158_v60, %v1141_v49  ;;  %v1154_v3 = vrot.slane %v1149_v62, 4  ;;  %v1165_v4 = vpack.c.bf16 %v1161_v1, %v1161_v1  ;;  %v1302_v58 = vrot.slane %v4653_v41, 4 }
 0x292   : > { %v1164_v5 = vpack.c.bf16 %v1159_v2, %v1159_v2  ;;  %v1157_v6 = vsel %vm1052_vm5, %v1149_v62, %v1156_v63  ;;  %vm908_vm7 = vcmp.le.s32.totalorder %v907_v13, %v905_v12 }
 0x293   : > { %v1155_v7 = vsel %vm1052_vm5, %v1154_v3, %v1137_v56  ;;  %3406 = vmatmul.msk.bf16.vlgmr.msra.gmra.mxu2 %vm1414_vm6, %v1165_v4  ;;  %v1163_v10 = vpack.c.bf16 %v1157_v6, %v1157_v6 }
 0x294   : > { %3405 = vmatmul.msk.bf16.vlgmr.msra.gmra.mxu1 %vm1414_vm6, %v1164_v5  ;;  %v1162_v9 = vpack.c.bf16 %v1155_v7, %v1155_v7 }
 0x297   : > { %3403 = vmatmul.msk.bf16.vlgmr.msra.gmra.mxu3 %vm1414_vm6, %v1162_v9  ;;  %3404 = vmatmul.msk.bf16.vlgmr.msrb.gmra.mxu0 %vm1414_vm6, %v1163_v10 }
 0x311   : > { %v1468_v14 = vpop.f32.mrf.mxu1 }
 0x312   : > { %v1495_v15 = vsel %vm908_vm7, %v1468_v14, -1e+30 }
 0x313   : > { %v1503_v16 = vsel %vm1414_vm6, %v1495_v15, -inf }
 0x314   : > { %1504 = vmax.xlane.f32.xlu0 %v1503_v16  ;;  %v1449_v17 = vpop.f32.mrf.mxu0 }
 0x315   : > { %v1494_v18 = vsel %vm908_vm7, %v1449_v17, -1e+30 }
 0x316   : > { %v1500_v19 = vsel %vm1414_vm6, %v1494_v18, -inf  ;;  %v1487_v20 = vpop.f32.mrf.mxu2 }
 0x317   : > { %1501 = vmax.xlane.f32.xlu2 %v1500_v19  ;;  %v1496_v21 = vsel %vm908_vm7, %v1487_v20, -1e+30 }
 0x318   : > { %v1506_v22 = vsel %vm1414_vm6, %v1496_v21, -inf }
 0x319   : > { %v1470_v23 = vpop.f32.mrf.mxu1  ;;  %1507 = vmax.xlane.f32.xlu1 %v1506_v22 }
 0x31a   : > { %v1430_v24 = vpop.f32.mrf.mxu3 }
 0x31b   : > { %v1493_v25 = vsel %vm908_vm7, %v1430_v24, -1e+30 }
 0x31c   : > { %v1451_v26 = vpop.f32.mrf.mxu0  ;;  %v1497_v27 = vsel %vm1414_vm6, %v1493_v25, -inf }
 0x31e   : > { %v1489_v28 = vpop.f32.mrf.mxu2 }
 0x31f   : > { %1498 = vmax.xlane.f32.xlu2 %v1497_v27 }
 0x322   : > { %v1432_v29 = vpop.f32.mrf.mxu3 }
 0x328   : > { %1297 = vrot.lane.b32.xlu0 %v4653_v41, %s4305_s15 }
 0x332   : > { %1294 = vrot.lane.b32.xlu1 %v4653_v41, %s4304_s22 }
 0x337   : > { %1291 = vrot.lane.b32.xlu2 %v4653_v41, %s4306_s24 }
 0x387   : > { %v1505_v30 = vpop.xlane.xlu0 %1504 }
 0x388   : > { %v1511_v31 = vsub.f32 %v1495_v15, %v1505_v30 }
 0x38a   : > { %v1517_v32 = vmul.f32 1.442695, %v1511_v31  ;;  %v1502_v33 = vpop.xlane.xlu2 %1501 }
 0x38b   : > { %v1510_v36 = vsub.f32 %v1494_v18, %v1502_v33 }
 0x38c   : > { %3766 = vpow2.f32 %v1517_v32  ;;  %v1508_v34 = vpop.xlane.xlu1 %1507 }
 0x38d   : > { %v1512_v35 = vsub.f32 %v1496_v21, %v1508_v34  ;;  %v1515_v46 = vmul.f32 1.442695, %v1510_v36 }
 0x38f   : > { %v1519_v37 = vmul.f32 1.442695, %v1512_v35 }
 0x391   : > { %3768 = vpow2.f32 %v1519_v37 }
 0x392   : > { %v4758_v38 = vpop.eup %3766  ;;  %v1499_v39 = vpop.xlane.xlu2 %1498 }
 0x393   : > { %v1509_v40 = vsub.f32 %v1493_v25, %v1499_v39  ;;  %v1527_v42 = vsel %vm1414_vm6, %v4758_v38, 0.0 }
 0x394   : > { %1528 = vadd.xlane.f32.xlu0 %v1527_v42 }
 0x395   : > { %v1513_v43 = vmul.f32 1.442695, %v1509_v40 }
 0x397   : > { %v4762_v44 = vpop.eup %3768  ;;  %3770 = vpow2.f32 %v1513_v43 }
 0x398   : > { %v1530_v45 = vsel %vm1414_vm6, %v4762_v44, 0.0  ;;  %3772 = vpow2.f32 %v1515_v46 }
 0x399   : > { %1531 = vadd.xlane.f32.xlu1 %v1530_v45 }
 0x39a   : > { %v1298_v47 = vpop.permute.xlu0 %1297  ;;  %v1292_v48 = vpop.permute.xlu2 %1291 }
 0x39b   : > { %v1314_v49 = vrot.slane %v1292_v48, 4  ;;  %v1312_v52 = vrot.slane %v1298_v47, 4 }
 0x39d   : > { %v4766_v51 = vpop.eup %3770  ;;  %v1315_v54 = vsel %vm1052_vm5, %v1298_v47, %v1314_v49  ;;  %v1313_v55 = vsel %vm1052_vm5, %v1312_v52, %v1292_v48 }
 0x39e   : > { %v1521_v53 = vsel %vm1414_vm6, %v4766_v51, 0.0  ;;  %v1323_v56 = vperm.slane %v1315_v54, %v4657_v50  ;;  %v4773_v57 = vpop.eup %3772  ;;  %v1319_v59 = vperm.slane %v1313_v55, %v4657_v50 }
 0x39f   : > { %1522 = vadd.xlane.f32.xlu2 %v1521_v53  ;;  %v1524_v3 = vsel %vm1414_vm6, %v4773_v57, 0.0 }
 0x3a0   : > { %v1336_v1 = vrot.slane %v1323_v56, 4  ;;  %v1324_v5 = vrot.slane %v1319_v59, 4 }
 0x3a4   : > { %v1295_v60 = vpop.permute.xlu1 %1294 }
 0x3a5   : > { %v1300_v62 = vrot.slane %v1295_v60, 4  ;;  %v1303_v63 = vsel %vm1052_vm5, %v1295_v60, %v1302_v58 }
 0x3a6   : > { %v1311_v2 = vperm.slane %v1303_v63, %v4657_v50 }
 0x3a7   : > { %v1301_v4 = vsel %vm1052_vm5, %v1300_v62, %v4653_v41  ;;  %1525 = vadd.xlane.f32.xlu2 %v1524_v3 }
 0x3a8   : > { %v1307_v6 = vperm.slane %v1301_v4, %v4657_v50  ;;  %v1337_v7 = vsel %vm1052_vm5, %v1336_v1, %v1311_v2  ;;  %v1338_v9 = vrot.slane %v1311_v2, 4 }
 0x3a9   : > { %v1343_v10 = vperm.slane %v1337_v7, %v4662_v61 }
 0x3aa   : > { %v1325_v11 = vsel %vm1052_vm5, %v1324_v5, %v1307_v6  ;;  %v1326_v12 = vrot.slane %v1307_v6, 4  ;;  %v1339_v13 = vsel %vm1052_vm5, %v1323_v56, %v1338_v9 }
 0x3ab   : > { %v1331_v14 = vperm.slane %v1325_v11, %v4662_v61  ;;  %v1347_v15 = vperm.slane %v1339_v13, %v4662_v61  ;;  %v1352_v17 = vrot.slane %v1343_v10, 4 }
 0x3ac   : > { %v1327_v41 = vsel %vm1052_vm5, %v1319_v59, %v1326_v12 }
 0x3ad   : > { %v1335_v16 = vperm.slane %v1327_v41, %v4662_v61  ;;  %v1354_v18 = vrot.slane %v1347_v15, 4  ;;  %v1348_v19 = vrot.slane %v1331_v14, 4  ;;  %v1353_v26 = vsel %vm1052_vm5, 0.0, %v1352_v17 }
 0x3af   : > { %v1350_v20 = vrot.slane %v1335_v16, 4  ;;  %v1355_v21 = vsel %vm1052_vm5, 0.0, %v1354_v18  ;;  %v1367_v22 = vsel %vm1052_vm5, %v1354_v18, %v1343_v10  ;;  %v1349_v32 = vsel %vm1052_vm5, 0.0, %v1348_v19 }
 0x3b0   : > { %v1371_v23 = vperm.slane %v1367_v22, %v4657_v50  ;;  %v1372_v24 = vrot.slane %v1355_v21, 4 }
 0x3b1   : > { %v1351_v25 = vsel %vm1052_vm5, 0.0, %v1350_v20  ;;  %v1356_v27 = vsel %vm1052_vm5, %v1350_v20, %v1331_v14 }
 0x3b2   : > { %v1361_v28 = vrot.slane %v1351_v25, 4  ;;  %v1373_v29 = vsel %vm1052_vm5, %v1372_v24, %v1353_v26  ;;  %v1360_v30 = vperm.slane %v1356_v27, %v4657_v50  ;;  %v1392_v31 = vrot.slane %v1371_v23, 4 }
 0x3b3   : > { %v1377_v33 = vperm.slane %v1373_v29, %v4657_v50 }
 0x3b4   : > { %v1362_v34 = vsel %vm1052_vm5, %v1361_v28, %v1349_v32  ;;  %v1380_v35 = vrot.slane %v1360_v30, 4 }
 0x3b5   : > { %v1366_v37 = vperm.slane %v1362_v34, %v4657_v50  ;;  %v1393_v39 = vsel %vm1052_vm5, %v1377_v33, %v1392_v31  ;;  %v1390_v40 = vrot.slane %v1377_v33, 4 }
 0x3b6   : > { %v1401_v42 = vperm.slane %v1393_v39, %v4662_v61 }
 0x3b7   : > { %v1381_v36 = vsel %vm1052_vm5, %v1366_v37, %v1380_v35  ;;  %v1378_v43 = vrot.slane %v1366_v37, 4  ;;  %v1391_v45 = vsel %vm1052_vm5, %v1390_v40, %v1371_v23 }
 0x3b8   : > { %v1389_v46 = vperm.slane %v1381_v36, %v4662_v61  ;;  %v1406_v47 = vrot.slane %v1401_v42, 4  ;;  %v1397_v48 = vperm.slane %v1391_v45, %v4662_v61 }
 0x3b9   : > { %v1379_v49 = vsel %vm1052_vm5, %v1378_v43, %v1360_v30 }
 0x3ba   : > { %v1407_v52 = vsel %vm1052_vm5, %v1406_v47, %v1389_v46  ;;  %v1408_v53 = vrot.slane %v1389_v46, 4  ;;  %v1385_v54 = vperm.slane %v1379_v49, %v4662_v61  ;;  %v1402_v55 = vrot.slane %v1397_v48, 4 }
 0x3bb   : > { %v1412_v56 = vpack.c.bf16 %v1407_v52, %v1407_v52 }
 0x3bc   : > { %v1403_v58 = vsel %vm1052_vm5, %v1402_v55, %v1385_v54  ;;  %v1404_v59 = vrot.slane %v1385_v54, 4  ;;  %v1409_v60 = vsel %vm1052_vm5, %v1401_v42, %v1408_v53 }
 0x3bd   : > { %v1588_v62 = vsel %vm1548_vm8, %v1412_v56, 0  ;;  %v1410_v63 = vpack.c.bf16 %v1403_v58, %v1403_v58  ;;  %v1413_v1 = vpack.c.bf16 %v1409_v60, %v1409_v60 }
 0x3be   : > { %1597 = vmatpush.bf16.msrb.mxu1 %v1588_v62  ;;  %v1405_v2 = vsel %vm1052_vm5, %v1397_v48, %v1404_v59 }
 0x3bf   : > { %v1550_v3 = vsel %vm1548_vm8, %v1410_v63, 0  ;;  %v1607_v4 = vsel %vm1548_vm8, %v1413_v1, 0  ;;  %v1411_v5 = vpack.c.bf16 %v1405_v2, %v1405_v2 }
 0x3c0   : > { %1559 = vmatpush.bf16.msrb.mxu3 %v1550_v3  ;;  %1616 = vmatpush.bf16.msrb.mxu2 %v1607_v4 }
 0x3c1   : > { %v1569_v6 = vsel %vm1548_vm8, %v1411_v5, 0 }
 0x3c2   : > { %1578 = vmatpush.bf16.msra.mxu0 %v1569_v6 }
 0x407   : > { %v1529_v7 = vpop.xlane.xlu0 %1528 }
 0x408   : > { %3774 = vrcp.f32 %v1529_v7 }
 0x40c   : > { %v1532_v9 = vpop.xlane.xlu1 %1531 }
 0x40d   : > { %3776 = vrcp.f32 %v1532_v9 }
 0x40e   : > { %v3775_v10 = vpop.eup %3774 }
 0x40f   : > { %v1539_v11 = vmul.f32 %v3775_v10, %v4758_v38 }
 0x411   : > { %v1543_v12 = vpack.c.bf16 %v1539_v11, %v1539_v11 }
 0x412   : > { %v1523_v13 = vpop.xlane.xlu2 %1522 }
 0x413   : > { %v3777_v14 = vpop.eup %3776  ;;  %3409 = vmatmul.msk.bf16.vlgmr.msrb.gmra.mxu1 %vm1414_vm6, %v1543_v12  ;;  %3778 = vrcp.f32 %v1523_v13 }
 0x414   : > { %v1540_v15 = vmul.f32 %v3777_v14, %v4762_v44 }
 0x416   : > { %v1544_v41 = vpack.c.bf16 %v1540_v15, %v1540_v15 }
 0x418   : > { %3410 = vmatmul.msk.bf16.vlgmr.msrb.gmra.mxu2 %vm1414_vm6, %v1544_v41 }
 0x419   : > { %v3779_v16 = vpop.eup %3778 }
 0x41a   : > { %v1537_v17 = vmul.f32 %v3779_v16, %v4766_v51  ;;  %v1526_v18 = vpop.xlane.xlu2 %1525 }
 0x41b   : > { %3780 = vrcp.f32 %v1526_v18 }
 0x41c   : > { %v1541_v19 = vpack.c.bf16 %v1537_v17, %v1537_v17 }
 0x41e   : > { %3407 = vmatmul.msk.bf16.vlgmr.msrb.gmra.mxu3 %vm1414_vm6, %v1541_v19 }
 0x421   : > { %v3781_v38 = vpop.eup %3780 }
 0x422   : > { %v1538_v20 = vmul.f32 %v3781_v38, %v4773_v57 }
 0x424   : > { %v1542_v21 = vpack.c.bf16 %v1538_v20, %v1538_v20 }
 0x426   : > { %3408 = vmatmul.msk.bf16.vlgmr.msra.gmra.mxu0 %vm1414_vm6, %v1542_v21 }
 0x490   : > { %v1599_v22 = vpop.f32.mrf.mxu1 }
 0x491   : > { %v1622_v24 = vrot.slane %v1599_v22, 4 }
 0x498   : > { %v1601_v23 = vpop.f32.mrf.mxu1 }
 0x49b   : > { %v1618_v44 = vpop.f32.mrf.mxu2 }
 0x49c   : > { %v1634_v26 = vrot.slane %v1618_v44, 4 }
 0x4a1   : > { %v1561_v25 = vpop.f32.mrf.mxu3 }
 0x4a2   : > { %v1623_v27 = vsel %vm1052_vm5, %v1622_v24, %v1561_v25  ;;  %v1624_v51 = vrot.slane %v1561_v25, 4 }
 0x4a3   : > { %v1629_v28 = vperm.slane %v1623_v27, %v4657_v50  ;;  %v1580_v29 = vpop.f32.mrf.mxu0  ;;  %v1620_v30 = vpop.f32.mrf.mxu2 }
 0x4a4   : > { %v1625_v31 = vsel %vm1052_vm5, %v1599_v22, %v1624_v51  ;;  %v1635_v57 = vsel %vm1052_vm5, %v1634_v26, %v1580_v29  ;;  %v1636_v32 = vrot.slane %v1580_v29, 4  ;;  %v3522_v30 = vld [vmem:[#allocation8 + $0x8] sm:$0xff] }
 0x4a5   : > { %v1633_v33 = vperm.slane %v1625_v31, %v4657_v50  ;;  %v1648_v34 = vrot.slane %v1629_v28, 4  ;;  %v1641_v35 = vperm.slane %v1635_v57, %v4657_v50  ;;  %1779 = vmatpush.bf16.msra.mxu3 %v3522_v30  ;;  %v3521_v31 = vld [vmem:[#allocation8] sm:$0xff] }
 0x4a6   : > { %v1637_v37 = vsel %vm1052_vm5, %v1618_v44, %v1636_v32 }
 0x4a7   : > { %v1660_v39 = vrot.slane %v1633_v33, 4  ;;  %v1645_v40 = vperm.slane %v1637_v37, %v4657_v50  ;;  %v1646_v42 = vrot.slane %v1641_v35, 4  ;;  %v1649_v36 = vsel %vm1052_vm5, %v1641_v35, %v1648_v34 }
 0x4a8   : > { %v1657_v43 = vperm.slane %v1649_v36, %v4662_v61 }
 0x4a9   : > { %v1647_v45 = vsel %vm1052_vm5, %v1646_v42, %v1629_v28  ;;  %v1658_v46 = vrot.slane %v1645_v40, 4  ;;  %v1661_v47 = vsel %vm1052_vm5, %v1645_v40, %v1660_v39  ;;  %v1563_v48 = vpop.f32.mrf.mxu3  ;;  %1780 = vmatpush.bf16.msra.mxu3 %v3521_v31  ;;  %v3754_v40 = vld [vmem:[#allocation10] ss:$0 sm:$0xff] }
 0x4aa   : > { %v1653_v49 = vperm.slane %v1647_v45, %v4662_v61  ;;  %v1669_v52 = vperm.slane %v1661_v47, %v4662_v61  ;;  %v1672_v53 = vrot.slane %v1657_v43, 4  ;;  %v3526_v47 = vld [vmem:[#allocation13 + $0x8] sm:$0xff]  ;;  %v3525_v48 = vld [vmem:[#allocation13] sm:$0xff] }
 0x4ab   : > { %v1659_v54 = vsel %vm1052_vm5, %v1658_v46, %v1633_v33  ;;  %v1582_v55 = vpop.f32.mrf.mxu0  ;;  %1883 = vmatpush.bf16.msra.mxu1 %v3526_v47 }
 0x4ac   : > { %v1665_v56 = vperm.slane %v1659_v54, %v4662_v61  ;;  %v1670_v58 = vrot.slane %v1653_v49, 4  ;;  %v1673_v59 = vsel %vm1052_vm5, 0.0, %v1672_v53  ;;  %v1676_v60 = vrot.slane %v1669_v52, 4 }
 0x4ad   : > { %v1678_v62 = vsel %vm1052_vm5, %v1672_v53, %v1653_v49  ;;  %v1683_v63 = vrot.slane %v1673_v59, 4  ;;  %v4885_v49 = vld [vmem:[%s899_s11] sm:$0xff]  ;;  %s4216_s11 = scalar_lea.hbm %s5336_s6, 16 }
 0x4ae   : > { %v1671_v1 = vsel %vm1052_vm5, 0.0, %v1670_v58  ;;  %v1674_v2 = vrot.slane %v1665_v56, 4  ;;  %v1677_v3 = vsel %vm1052_vm5, 0.0, %v1676_v60  ;;  %v1682_v4 = vperm.slane %v1678_v62, %v4657_v50  ;;  %v3523_v62 = vld [vmem:[#allocation11] sm:$0xff] }
 0x4af   : > { %v1694_v5 = vrot.slane %v1677_v3, 4  ;;  %v1684_v6 = vsel %vm1052_vm5, %v1683_v63, %v1671_v1  ;;  %v1689_v7 = vsel %vm1052_vm5, %v1676_v60, %v1665_v56  ;;  %1884 = vmatpush.bf16.msra.mxu1 %v3525_v48  ;;  %v3524_v60 = vld [vmem:[#allocation11 + $0x8] sm:$0xff] }
 0x4b0   : > { %v1675_v9 = vsel %vm1052_vm5, 0.0, %v1674_v2  ;;  %v1688_v10 = vperm.slane %v1684_v6, %v4657_v50  ;;  %v1693_v11 = vperm.slane %v1689_v7, %v4657_v50  ;;  %v1702_v12 = vrot.slane %v1682_v4, 4  ;;  %1845 = vmatpush.bf16.msrb.mxu0 %v3524_v60 }
 0x4b1   : > { %v1695_v13 = vsel %vm1052_vm5, %v1694_v5, %v1675_v9 }
 0x4b2   : > { %v1699_v14 = vperm.slane %v1695_v13, %v4657_v50  ;;  %v1703_v15 = vsel %vm1052_vm5, %v1688_v10, %v1702_v12  ;;  %v1714_v41 = vrot.slane %v1693_v11, 4  ;;  %v1700_v16 = vrot.slane %v1688_v10, 4  ;;  %3441 = vmatmul.msk.bf16.vlgmr.msra.gmra.mxu1 %vm911_vm0, %v4885_v49  ;;  %v3755_v10 = vld [vmem:[%s5334_s0] ss:$0 sm:$0xff]  ;;  %s3372_s0 = sshll.u32 %s888_s26, 3 }
 0x4b3   : > { %v1711_v17 = vperm.slane %v1703_v15, %v4662_v61  ;;  %v3756_v13 = vld [vmem:[#allocation2] ss:$0 sm:$0xff] }
 0x4b4   : > { %v1715_v18 = vsel %vm1052_vm5, %v1699_v14, %v1714_v41  ;;  %v1701_v19 = vsel %vm1052_vm5, %v1700_v16, %v1682_v4  ;;  %v1712_v38 = vrot.slane %v1699_v14, 4  ;;  %1846 = vmatpush.bf16.msrb.mxu0 %v3523_v62 }
 0x4b5   : > { %v1723_v20 = vperm.slane %v1715_v18, %v4662_v61  ;;  %v1730_v21 = vrot.slane %v1711_v17, 4  ;;  %v1707_v22 = vperm.slane %v1701_v19, %v4662_v61 }
 0x4b6   : > { %v1713_v23 = vsel %vm1052_vm5, %v1712_v38, %v1693_v11 }
 0x4b7   : > { %v1731_v44 = vsel %vm1052_vm5, %v1723_v20, %v1730_v21  ;;  %v1728_v24 = vrot.slane %v1723_v20, 4  ;;  %v1719_v25 = vperm.slane %v1713_v23, %v4662_v61  ;;  %v1726_v26 = vrot.slane %v1707_v22, 4 }
 0x4b8   : > { %1741 = vrot.lane.b32.xlu0 %v1731_v44, %s4309_s25 }
 0x4b9   : > { %v1729_v27 = vsel %vm1052_vm5, %v1728_v24, %v1711_v17  ;;  %v1724_v51 = vrot.slane %v1719_v25, 4  ;;  %v1727_v28 = vsel %vm1052_vm5, %v1719_v25, %v1726_v26 }
 0x4ba   : > { %1737 = vrot.lane.b32.xlu2 %v1729_v27, %s4310_s1  ;;  %1733 = vrot.lane.b32.xlu1 %v1727_v28, %s4311_s27 }
 0x4bb   : > { %v1725_v29 = vsel %vm1052_vm5, %v1724_v51, %v1707_v22 }
 0x514   : > { %v1738_v32 = vpop.permute.xlu2 %1737 }
 0x52a   : > { %v1742_v34 = vpop.permute.xlu0 %1741 }
 0x52c   : > { %v1734_v57 = vpop.permute.xlu1 %1733 }
 0x52d   : > { %v1744_v33 = vsel %vm1414_vm6, %v1725_v29, %v1734_v57 }
 0x52e   : > { %v1746_v35 = vsel %vm1745_vm9, %v1744_v33, %v1738_v32 }
 0x52f   : > { %v1748_v37 = vsel %vm1747_vm10, %v1746_v35, %v1742_v34  ;;  %v1886_v56 = vpop.f32.mrf.mxu1 }
 0x530   : > { %v1749_v39 = vpack.c.bf16 %v1748_v37, %v1748_v37  ;;  %v2067_v17 = vrot.slane %v1886_v56, 4 }
 0x532   : > { %3419 = vmatmul.msk.bf16.vlgmr.msra.gmra.mxu3 %vm911_vm0, %v1749_v39 }
 0x537   : > { %v1888_v58 = vpop.f32.mrf.mxu1 }
 0x538   : > { %v3722_v59 = vpack.i.bf16 %v1888_v58, %v1886_v56  ;;  %v2123_v18 = vrot.slane %v1888_v58, 4 }
 0x53a   : > { %3723 = vrot.lane.b32.xlu2 %v3722_v59, %s4306_s24 }
 0x542   : > { %3728 = vrot.lane.b32.xlu2 %v3722_v59, %s4304_s22 }
 0x54a   : > { %3733 = vrot.lane.b32.xlu2 %v3722_v59, %s4305_s15 }
 0x594   : > { %v3724_v16 = vpop.permute.xlu2 %3723 }
 0x595   : > { %v3726_v21 = vunpack.i.h.bf16 %v3724_v16  ;;  %v3725_v22 = vunpack.i.l.bf16 %v3724_v16 }
 0x597   : > { %v2135_v29 = vrot.slane %v3726_v21, 4  ;;  %v2079_v30 = vrot.slane %v3725_v22, 4 }
 0x59c   : > { %v3729_v19 = vpop.permute.xlu2 %3728 }
 0x59d   : > { %v3731_v38 = vunpack.i.h.bf16 %v3729_v19  ;;  %v3730_v20 = vunpack.i.l.bf16 %v3729_v19 }
 0x59f   : > { %v2121_v23 = vrot.slane %v3731_v38, 4  ;;  %v2124_v44 = vsel %vm1052_vm5, %v3731_v38, %v2123_v18  ;;  %v2065_v24 = vrot.slane %v3730_v20, 4  ;;  %v2068_v25 = vsel %vm1052_vm5, %v3730_v20, %v2067_v17 }
 0x5a0   : > { %v2132_v51 = vperm.slane %v2124_v44, %v4657_v50  ;;  %v2076_v28 = vperm.slane %v2068_v25, %v4657_v50 }
 0x5a1   : > { %v2066_v26 = vsel %vm1052_vm5, %v2065_v24, %v1886_v56  ;;  %v2122_v27 = vsel %vm1052_vm5, %v2121_v23, %v1888_v58 }
 0x5a2   : > { %v2072_v31 = vperm.slane %v2066_v26, %v4657_v50  ;;  %v2128_v32 = vperm.slane %v2122_v27, %v4657_v50  ;;  %v2159_v35 = vrot.slane %v2132_v51, 4  ;;  %v2103_v37 = vrot.slane %v2076_v28, 4 }
 0x5a4   : > { %v3734_v57 = vpop.permute.xlu2 %3733  ;;  %v2147_v48 = vrot.slane %v2128_v32, 4 }
 0x5a5   : > { %v3736_v33 = vunpack.i.h.bf16 %v3734_v57  ;;  %v3735_v34 = vunpack.i.l.bf16 %v3734_v57 }
 0x5a7   : > { %v2133_v39 = vrot.slane %v3736_v33, 4 }
 0x5b5   : > { %v1782_v42 = vpop.f32.mrf.mxu3 }
 0x5b6   : > { %v1783_v36 = vadd.f32 %v3754_v40, %v1782_v42  ;;  %v2077_v40 = vrot.slane %v3735_v34, 4  ;;  %v2080_v42 = vsel %vm1052_vm5, %v3735_v34, %v2079_v30 }
 0x5b8   : > { %v4876_v43 = vadd.f32 %v1783_v36, %v4611_v0  ;;  %v2136_v36 = vsel %vm1052_vm5, %v3736_v33, %v2135_v29 }
 0x5b9   : > { %v2144_v47 = vperm.slane %v2136_v36, %v4657_v50 }
 0x5ba   : > { %v1789_v45 = vsel %vm911_vm0, %v4876_v43, 0.0 }
 0x5bb   : > { %1790 = vadd.xlane.f32.xlu1 %v1789_v45  ;;  %v2091_v45 = vrot.slane %v2072_v31, 4  ;;  %v2157_v59 = vrot.slane %v2144_v47, 4  ;;  %v2160_v60 = vsel %vm1052_vm5, %v2144_v47, %v2159_v35 }
 0x5bc   : > { %v2168_v17 = vperm.slane %v2160_v60, %v4662_v61 }
 0x5bd   : > { %v1784_v46 = vpop.f32.mrf.mxu3 }
 0x5be   : > { %v2088_v46 = vperm.slane %v2080_v42, %v4657_v50  ;;  %v2175_v24 = vrot.slane %v2168_v17, 4 }
 0x5c0   : > { %v2176_v30 = vsel %vm1052_vm5, 0.0, %v2175_v24 }
 0x5c1   : > { %v2247_v33 = vrot.slane %v2176_v30, 4 }
 0x62e   : > { %v1791_v0 = vpop.xlane.xlu1 %1790 }
 0x62f   : > { %v1792_v52 = vmul.f32 %v1791_v0, %v4615_v8  ;;  %v2078_v0 = vsel %vm1052_vm5, %v2077_v40, %v3725_v22 }
 0x631   : > { %v1793_v53 = vsub.f32 %v4876_v43, %v1792_v52  ;;  %v2134_v52 = vsel %vm1052_vm5, %v2133_v39, %v3726_v21 }
 0x632   : > { %v2140_v56 = vperm.slane %v2134_v52, %v4657_v50 }
 0x633   : > { %v1794_v54 = vmul.f32 %v1793_v53, %v1793_v53 }
 0x635   : > { %v1795_v55 = vsel %vm911_vm0, %v1794_v54, 0.0  ;;  %v2101_v54 = vrot.slane %v2088_v46, 4 }
 0x636   : > { %1796 = vadd.xlane.f32.xlu0 %v1795_v55  ;;  %v2104_v55 = vsel %vm1052_vm5, %v2088_v46, %v2103_v37 }
 0x637   : > { %v2112_v58 = vperm.slane %v2104_v55, %v4662_v61 }
 0x6a9   : > { %v1797_v63 = vpop.xlane.xlu0 %1796 }
 0x6aa   : > { %v1798_v1 = vmul.f32 %v1797_v63, %v4615_v8 }
 0x6ac   : > { %v1799_v2 = vadd.f32 1e-05, %v1798_v1  ;;  %v2102_v1 = vsel %vm1052_vm5, %v2101_v54, %v2076_v28 }
 0x6ae   : > { %3782 = vrsqrt.f32 %v1799_v2  ;;  %vm1806_vm12 = vweird.f32 %v1799_v2 }
 0x6b4   : > { %v3783_v3 = vpop.eup %3782 }
 0x6b5   : > { %v1801_v4 = vmul.f32 %v3783_v3, %v1799_v2  ;;  %vm1807_vm11 = vweird.f32 %v3783_v3  ;;  %v2145_v2 = vrot.slane %v2140_v56, 4 }
 0x6b6   : > { %vm1808_vm13 = vmor %vm1806_vm12, %vm1807_vm11 }
 0x6b7   : > { %v1802_v5 = vmul.f32 %v3783_v3, %v1801_v4  ;;  %v2108_v4 = vperm.slane %v2102_v1, %v4662_v61 }
 0x6b9   : > { %v1803_v6 = vmul.f32 0.5, %v1802_v5  ;;  %v2119_v5 = vrot.slane %v2112_v58, 4 }
 0x6bb   : > { %v1804_v7 = vsub.f32 1.5, %v1803_v6  ;;  %v2148_v6 = vsel %vm1052_vm5, %v2140_v56, %v2147_v48  ;;  %v2188_v21 = vsel %vm1052_vm5, %v2119_v5, %v2108_v4 }
 0x6bc   : > { %v2192_v27 = vperm.slane %v2188_v21, %v4657_v50 }
 0x6bd   : > { %v1805_v9 = vmul.f32 %v3783_v3, %v1804_v7 }
 0x6be   : > { %v2213_v55 = vrot.slane %v2192_v27, 4 }
 0x6bf   : > { %v1809_v11 = vsel %vm1808_vm13, %v3783_v3, %v1805_v9  ;;  %v2146_v9 = vsel %vm1052_vm5, %v2145_v2, %v2128_v32 }
 0x6c0   : > { %v1810_v12 = vmul.f32 %v1809_v11, %v1793_v53  ;;  %v2084_v53 = vperm.slane %v2078_v0, %v4657_v50  ;;  %v2158_v11 = vsel %vm1052_vm5, %v2157_v59, %v2132_v51 }
 0x6c1   : > { %v2164_v16 = vperm.slane %v2158_v11, %v4662_v61 }
 0x6c2   : > { %v1814_v14 = vmul.f32 %v3755_v10, %v1810_v12  ;;  %v2089_v62 = vrot.slane %v2084_v53, 4  ;;  %v2092_v63 = vsel %vm1052_vm5, %v2084_v53, %v2091_v45  ;;  %v2156_v10 = vperm.slane %v2148_v6, %v4662_v61 }
 0x6c3   : > { %v2100_v3 = vperm.slane %v2092_v63, %v4662_v61  ;;  %v2173_v44 = vrot.slane %v2164_v16, 4  ;;  %v2242_v32 = vsel %vm1052_vm5, %v2175_v24, %v2164_v16 }
 0x6c4   : > { %v1818_v15 = vadd.f32 %v3756_v13, %v1814_v14  ;;  %v2090_v7 = vsel %vm1052_vm5, %v2089_v62, %v2072_v31  ;;  %v2117_v14 = vrot.slane %v2108_v4, 4  ;;  %v2171_v18 = vrot.slane %v2156_v10, 4 }
 0x6c5   : > { %v2096_v12 = vperm.slane %v2090_v7, %v4662_v61  ;;  %v2115_v13 = vrot.slane %v2100_v3, 4  ;;  %v2174_v29 = vsel %vm1052_vm5, 0.0, %v2173_v44  ;;  %v2246_v37 = vperm.slane %v2242_v32, %v4657_v50 }
 0x6c6   : > { %v1819_v41 = vpack.c.bf16 %v1818_v15, %v1818_v15  ;;  %v2120_v15 = vsel %vm1052_vm5, 0.0, %v2119_v5  ;;  %v2118_v20 = vsel %vm1052_vm5, 0.0, %v2117_v14  ;;  %v2172_v23 = vsel %vm1052_vm5, 0.0, %v2171_v18 }
 0x6c7   : > { %v2113_v19 = vrot.slane %v2096_v12, 4  ;;  %v2116_v38 = vsel %vm1052_vm5, 0.0, %v2115_v13  ;;  %v2193_v51 = vrot.slane %v2120_v15, 4  ;;  %v2236_v31 = vrot.slane %v2172_v23, 4  ;;  %v3528_v23 = vld [vmem:[#allocation14 + $0x8] sm:$0xff] }
 0x6c8   : > { %3428 = vmatmul.msk.bf16.vlgmr.msrb.gmra.mxu0 %vm911_vm0, %v1819_v41  ;;  %v2152_v41 = vperm.slane %v2146_v9, %v4662_v61  ;;  %v2182_v26 = vrot.slane %v2116_v38, 4  ;;  %v2177_v39 = vsel %vm1052_vm5, %v2115_v13, %v2096_v12  ;;  %v2248_v42 = vsel %vm1052_vm5, %v2247_v33, %v2174_v29  ;;  %1913 = vmatpush.bf16.msra.mxu2 %v3528_v23 }
 0x6c9   : > { %v2114_v25 = vsel %vm1052_vm5, 0.0, %v2113_v19  ;;  %v2194_v57 = vsel %vm1052_vm5, %v2193_v51, %v2118_v20  ;;  %v2181_v36 = vperm.slane %v2177_v39, %v4657_v50  ;;  %v2252_v47 = vperm.slane %v2248_v42, %v4657_v50 }
 0x6ca   : > { %v2169_v22 = vrot.slane %v2152_v41, 4  ;;  %v2183_v34 = vsel %vm1052_vm5, %v2182_v26, %v2114_v25  ;;  %v2198_v35 = vperm.slane %v2194_v57, %v4657_v50  ;;  %v2231_v45 = vsel %vm1052_vm5, %v2171_v18, %v2152_v41 }
 0x6cb   : > { %v2187_v40 = vperm.slane %v2183_v34, %v4657_v50  ;;  %v2235_v52 = vperm.slane %v2231_v45, %v4657_v50  ;;  %v2201_v54 = vrot.slane %v2181_v36, 4  ;;  %v2267_v56 = vrot.slane %v2246_v37, 4 }
 0x6cc   : > { %v2170_v28 = vsel %vm1052_vm5, 0.0, %v2169_v22  ;;  %v2211_v0 = vrot.slane %v2198_v35, 4  ;;  %v2265_v60 = vrot.slane %v2252_v47, 4  ;;  %v2214_v6 = vsel %vm1052_vm5, %v2198_v35, %v2213_v55 }
 0x6cd   : > { %v2237_v46 = vsel %vm1052_vm5, %v2236_v31, %v2170_v28  ;;  %v2199_v48 = vrot.slane %v2187_v40, 4  ;;  %v2255_v62 = vrot.slane %v2235_v52, 4  ;;  %v2202_v3 = vsel %vm1052_vm5, %v2187_v40, %v2201_v54  ;;  %v3527_v40 = vld [vmem:[#allocation14] sm:$0xff] }
 0x6ce   : > { %v2241_v53 = vperm.slane %v2237_v46, %v4657_v50  ;;  %v2212_v59 = vsel %vm1052_vm5, %v2211_v0, %v2192_v27  ;;  %v2266_v4 = vsel %vm1052_vm5, %v2265_v60, %v2246_v37  ;;  %v2210_v5 = vperm.slane %v2202_v3, %v4662_v61  ;;  %1914 = vmatpush.bf16.msra.mxu2 %v3527_v40 }
 0x6cf   : > { %v2200_v58 = vsel %vm1052_vm5, %v2199_v48, %v2181_v36  ;;  %v2218_v1 = vperm.slane %v2212_v59, %v4662_v61  ;;  %v2272_v11 = vperm.slane %v2266_v4, %v4662_v61  ;;  %v2222_v14 = vperm.slane %v2214_v6, %v4662_v61 }
 0x6d0   : > { %v2206_v63 = vperm.slane %v2200_v58, %v4662_v61  ;;  %v2253_v2 = vrot.slane %v2241_v53, 4  ;;  %v2256_v7 = vsel %vm1052_vm5, %v2241_v53, %v2255_v62  ;;  %v2268_v41 = vsel %vm1052_vm5, %v2252_v47, %v2267_v56 }
 0x6d1   : > { %v2223_v9 = vrot.slane %v2218_v1, 4  ;;  %v2264_v15 = vperm.slane %v2256_v7, %v4662_v61  ;;  %v2277_v17 = vrot.slane %v2272_v11, 4  ;;  %v2276_v19 = vperm.slane %v2268_v41, %v4662_v61  ;;  %3450 = vmatmul.msk.bf16.vlgmr.msra.gmra.mxu2 %vm911_vm0, %v4885_v49 }
 0x6d2   : > { %v2254_v10 = vsel %vm1052_vm5, %v2253_v2, %v2235_v52  ;;  %v2225_v12 = vrot.slane %v2206_v63, 4  ;;  %v2227_v22 = vrot.slane %v2222_v14, 4  ;;  %v2229_v25 = vrot.slane %v2210_v5, 4 }
 0x6d3   : > { %v2260_v13 = vperm.slane %v2254_v10, %v4662_v61  ;;  %v2224_v16 = vsel %vm1052_vm5, %v2223_v9, %v2206_v63  ;;  %v2281_v24 = vrot.slane %v2276_v19, 4  ;;  %v2283_v26 = vrot.slane %v2264_v15, 4 }
 0x6d4   : > { %v2226_v18 = vsel %vm1052_vm5, %v2218_v1, %v2225_v12  ;;  %v2285_v38 = vpack.c.bf16 %v2224_v16, %v2224_v16  ;;  %v2228_v31 = vsel %vm1052_vm5, %v2227_v22, %v2210_v5  ;;  %v2230_v32 = vsel %vm1052_vm5, %v2222_v14, %v2229_v25 }
 0x6d5   : > { %v2279_v20 = vrot.slane %v2260_v13, 4  ;;  %v2287_v21 = vpack.c.bf16 %v2226_v18, %v2226_v18  ;;  %v2278_v44 = vsel %vm1052_vm5, %v2277_v17, %v2260_v13  ;;  %v2282_v57 = vsel %vm1052_vm5, %v2281_v24, %v2264_v15 }
 0x6d6   : > { %v2286_v27 = vpack.c.bf16 %v2278_v44, %v2278_v44  ;;  %v2543_v51 = vunpack.c.l.b16 %v2285_v38  ;;  %v2289_v34 = vpack.c.bf16 %v2228_v31, %v2228_v31  ;;  %v2290_v35 = vpack.c.bf16 %v2282_v57, %v2282_v57 }
 0x6d7   : > { %v2280_v28 = vsel %vm1052_vm5, %v2272_v11, %v2279_v20  ;;  %v2567_v29 = vunpack.c.l.b16 %v2287_v21  ;;  %v2284_v37 = vsel %vm1052_vm5, %v2276_v19, %v2283_v26  ;;  %v2291_v42 = vpack.c.bf16 %v2230_v32, %v2230_v32 }
 0x6d8   : > { %v2288_v30 = vpack.c.bf16 %v2280_v28, %v2280_v28  ;;  %v2544_v33 = vunpack.c.l.b16 %v2286_v27  ;;  %v2292_v36 = vpack.c.bf16 %v2284_v37, %v2284_v37  ;;  %v2591_v46 = vunpack.c.l.b16 %v2289_v34 }
 0x6d9   : > { %v2592_v47 = vunpack.c.l.b16 %v2290_v35  ;;  %v2615_v0 = vunpack.c.l.b16 %v2291_v42 }
 0x6da   : > { %v2568_v39 = vunpack.c.l.b16 %v2288_v30  ;;  %v2545_v45 = vpack.c.b16 %v2544_v33, %v2543_v51  ;;  %v2616_v52 = vunpack.c.l.b16 %v2292_v36 }
 0x6db   : > { %v2593_v54 = vpack.c.b16 %v2592_v47, %v2591_v46 }
 0x6dc   : > { %v2569_v48 = vpack.c.b16 %v2568_v39, %v2567_v29  ;;  %v2550_v53 = vsel %vm1414_vm6, %v2545_v45, 0  ;;  %v2617_v56 = vpack.c.b16 %v2616_v52, %v2615_v0 }
 0x6dd   : > { %2559 = vmatpush.bf16.xpose.msrb.mxu3 %v2550_v53  ;;  %v2598_v58 = vsel %vm1414_vm6, %v2593_v54, 0 }
 0x6de   : > { %v2574_v55 = vsel %vm1414_vm6, %v2569_v48, 0  ;;  %2607 = vmatpush.bf16.xpose.msrb.mxu1 %v2598_v58  ;;  %v2622_v59 = vsel %vm1414_vm6, %v2617_v56, 0 }
 0x6df   : > { %2583 = vmatpush.bf16.xpose.msra.mxu0 %v2574_v55  ;;  %2631 = vmatpush.bf16.xpose.msrb.mxu2 %v2622_v59 }
 0x745   : > { %v1848_v60 = vpop.f32.mrf.mxu0 }
 0x746   : > { %v1852_v62 = vmul.f32 0.35355338, %v1848_v60 }
 0x748   : > { %1928 = vrot.lane.b32.xlu1 %v1852_v62, %s4305_s15  ;;  %1922 = vrot.lane.b32.xlu2 %v1852_v62, %s4306_s24  ;;  %v1933_v4 = vrot.slane %v1852_v62, 4 }
 0x74d   : > { %v1850_v63 = vpop.f32.mrf.mxu0 }
 0x750   : > { %1925 = vrot.lane.b32.xlu2 %v1852_v62, %s4304_s22 }
 0x7a2   : > { %v1923_v1 = vpop.permute.xlu2 %1922 }
 0x7a3   : > { %v1945_v7 = vrot.slane %v1923_v1, 4 }
 0x7aa   : > { %v1926_v2 = vpop.permute.xlu2 %1925 }
 0x7ab   : > { %v1931_v3 = vrot.slane %v1926_v2, 4  ;;  %v1934_v5 = vsel %vm1052_vm5, %v1926_v2, %v1933_v4 }
 0x7ac   : > { %v1942_v6 = vperm.slane %v1934_v5, %v4657_v50 }
 0x7ad   : > { %v1932_v49 = vsel %vm1052_vm5, %v1931_v3, %v1852_v62 }
 0x7ae   : > { %v1938_v9 = vperm.slane %v1932_v49, %v4657_v50  ;;  %v1969_v13 = vrot.slane %v1942_v6, 4 }
 0x7b0   : > { %v1957_v41 = vrot.slane %v1938_v9, 4 }
 0x7ba   : > { %v1929_v10 = vpop.permute.xlu1 %1928 }
 0x7bb   : > { %v1943_v11 = vrot.slane %v1929_v10, 4  ;;  %v1946_v12 = vsel %vm1052_vm5, %v1929_v10, %v1945_v7  ;;  %v5033_v10 = vpop.f32.mrf.mxu2 }
 0x7bc   : > { %v1954_v14 = vperm.slane %v1946_v12, %v4657_v50 }
 0x7bd   : > { %v1944_v15 = vsel %vm1052_vm5, %v1943_v11, %v1923_v1 }
 0x7be   : > { %v1950_v16 = vperm.slane %v1944_v15, %v4657_v50  ;;  %v1967_v17 = vrot.slane %v1954_v14, 4  ;;  %v1970_v18 = vsel %vm1052_vm5, %v1954_v14, %v1969_v13 }
 0x7bf   : > { %v1978_v19 = vperm.slane %v1970_v18, %v4662_v61 }
 0x7c0   : > { %v1955_v38 = vrot.slane %v1950_v16, 4  ;;  %v1958_v20 = vsel %vm1052_vm5, %v1950_v16, %v1957_v41  ;;  %v1968_v21 = vsel %vm1052_vm5, %v1967_v17, %v1942_v6 }
 0x7c1   : > { %v1966_v22 = vperm.slane %v1958_v20, %v4662_v61  ;;  %v1974_v23 = vperm.slane %v1968_v21, %v4662_v61  ;;  %v1985_v44 = vrot.slane %v1978_v19, 4 }
 0x7c2   : > { %v1956_v24 = vsel %vm1052_vm5, %v1955_v38, %v1938_v9 }
 0x7c3   : > { %v1962_v25 = vperm.slane %v1956_v24, %v4662_v61  ;;  %v1981_v26 = vrot.slane %v1966_v22, 4  ;;  %v1983_v27 = vrot.slane %v1974_v23, 4  ;;  %v1986_v51 = vsel %vm1052_vm5, 0.0, %v1985_v44  ;;  %v5035_v11 = vpop.f32.mrf.mxu2 }
 0x7c4   : > { %v1998_v28 = vsel %vm1052_vm5, %v1985_v44, %v1974_v23  ;;  %v2003_v29 = vrot.slane %v1986_v51, 4  ;;  %v3737_v12 = vpack.i.bf16 %v5035_v11, %v5033_v10 }
 0x7c5   : > { %v1979_v30 = vrot.slane %v1962_v25, 4  ;;  %v1982_v31 = vsel %vm1052_vm5, 0.0, %v1981_v26  ;;  %v1984_v57 = vsel %vm1052_vm5, 0.0, %v1983_v27  ;;  %v1987_v32 = vsel %vm1052_vm5, %v1981_v26, %v1962_v25 }
 0x7c6   : > { %v1991_v33 = vperm.slane %v1987_v32, %v4657_v50  ;;  %v1992_v34 = vrot.slane %v1982_v31, 4  ;;  %v2002_v35 = vperm.slane %v1998_v28, %v4657_v50  ;;  %v2004_v37 = vsel %vm1052_vm5, %v2003_v29, %v1984_v57  ;;  %3738 = vrot.lane.b32.xlu1 %v3737_v12, %s4306_s24  ;;  %s890_s24 = scalar_lea.vmem [#allocation23], %s3372_s0 }
 0x7c7   : > { %v1980_v39 = vsel %vm1052_vm5, 0.0, %v1979_v30  ;;  %v2008_v40 = vperm.slane %v2004_v37, %v4657_v50 }
 0x7c8   : > { %v1993_v42 = vsel %vm1052_vm5, %v1992_v34, %v1980_v39  ;;  %v2011_v36 = vrot.slane %v1991_v33, 4  ;;  %v2023_v45 = vrot.slane %v2002_v35, 4 }
 0x7c9   : > { %v1997_v46 = vperm.slane %v1993_v42, %v4657_v50  ;;  %v2021_v47 = vrot.slane %v2008_v40, 4 }
 0x7ca   : > { %v2024_v48 = vsel %vm1052_vm5, %v2008_v40, %v2023_v45 }
 0x7cb   : > { %v2022_v0 = vsel %vm1052_vm5, %v2021_v47, %v2002_v35  ;;  %v2012_v52 = vsel %vm1052_vm5, %v1997_v46, %v2011_v36  ;;  %v2032_v53 = vperm.slane %v2024_v48, %v4662_v61  ;;  %v2009_v54 = vrot.slane %v1997_v46, 4 }
 0x7cc   : > { %v2020_v55 = vperm.slane %v2012_v52, %v4662_v61  ;;  %v2028_v56 = vperm.slane %v2022_v0, %v4662_v61 }
 0x7cd   : > { %v2037_v58 = vrot.slane %v2032_v53, 4  ;;  %v2010_v59 = vsel %vm1052_vm5, %v2009_v54, %v1991_v33 }
 0x7ce   : > { %v2016_v60 = vperm.slane %v2010_v59, %v4662_v61  ;;  %v2033_v62 = vrot.slane %v2028_v56, 4  ;;  %v2039_v63 = vrot.slane %v2020_v55, 4  ;;  %3748 = vrot.lane.b32.xlu1 %v3737_v12, %s4305_s15  ;;  %s3140_s15 = scalar_lea.hbm %s5335_s30, %s3510_s5 }
 0x7cf   : > { %v2038_v1 = vsel %vm1052_vm5, %v2037_v58, %v2020_v55 }
 0x7d0   : > { %v2043_v2 = vpack.c.bf16 %v2038_v1, %v2038_v1  ;;  %v2034_v3 = vsel %vm1052_vm5, %v2033_v62, %v2016_v60  ;;  %v2040_v4 = vsel %vm1052_vm5, %v2032_v53, %v2039_v63  ;;  %v2035_v5 = vrot.slane %v2016_v60, 4 }
 0x7d1   : > { %v2041_v49 = vpack.c.bf16 %v2034_v3, %v2034_v3  ;;  %v2044_v6 = vpack.c.bf16 %v2040_v4, %v2040_v4  ;;  %v2315_v62 = vrot.slane %v5033_v10, 4  ;;  %v2371_v63 = vrot.slane %v5035_v11, 4 }
 0x7d2   : > { %3453 = vmatmul.msk.bf16.vlgmr.msrb.gmra.mxu1 %vm1414_vm6, %v2043_v2  ;;  %v2036_v7 = vsel %vm1052_vm5, %v2028_v56, %v2035_v5 }
 0x7d3   : > { %3451 = vmatmul.msk.bf16.vlgmr.msrb.gmra.mxu3 %vm1414_vm6, %v2041_v49  ;;  %3454 = vmatmul.msk.bf16.vlgmr.msrb.gmra.mxu2 %vm1414_vm6, %v2044_v6  ;;  %v2042_v9 = vpack.c.bf16 %v2036_v7, %v2036_v7 }
 0x7d5   : > { %3452 = vmatmul.msk.bf16.vlgmr.msra.gmra.mxu0 %vm1414_vm6, %v2042_v9 }
 0x838   : > { %v3739_v57 = vpop.permute.xlu1 %3738 }
 0x839   : > { %v3741_v36 = vunpack.i.h.bf16 %v3739_v57  ;;  %v3740_v45 = vunpack.i.l.bf16 %v3739_v57 }
 0x83b   : > { %v2383_v0 = vrot.slane %v3741_v36, 4  ;;  %v2327_v52 = vrot.slane %v3740_v45, 4 }
 0x840   : > { %v3749_v42 = vpop.permute.xlu1 %3748 }
 0x841   : > { %v3751_v46 = vunpack.i.h.bf16 %v3749_v42  ;;  %v3750_v47 = vunpack.i.l.bf16 %v3749_v42 }
 0x843   : > { %v2381_v54 = vrot.slane %v3751_v46, 4  ;;  %v2325_v55 = vrot.slane %v3750_v47, 4  ;;  %v2328_v56 = vsel %vm1052_vm5, %v3750_v47, %v2327_v52  ;;  %v2384_v58 = vsel %vm1052_vm5, %v3751_v46, %v2383_v0 }
 0x844   : > { %v2336_v1 = vperm.slane %v2328_v56, %v4657_v50  ;;  %v2392_v2 = vperm.slane %v2384_v58, %v4657_v50 }
 0x845   : > { %v2326_v59 = vsel %vm1052_vm5, %v2325_v55, %v3740_v45  ;;  %v2382_v60 = vsel %vm1052_vm5, %v2381_v54, %v3741_v36 }
 0x846   : > { %v2332_v4 = vperm.slane %v2326_v59, %v4657_v50  ;;  %v2388_v5 = vperm.slane %v2382_v60, %v4657_v50 }
 0x84f   : > { %v2609_v13 = vpop.f32.mrf.mxu1 }
 0x850   : > { %v2643_v21 = vsel %vm1745_vm9, %v2609_v13, -inf }
 0x852   : > { %v2585_v14 = vpop.f32.mrf.mxu0 }
 0x853   : > { %v2640_v22 = vsel %vm1745_vm9, %v2585_v14, -inf }
 0x856   : > { %v2561_v15 = vpop.f32.mrf.mxu3  ;;  %v2633_v41 = vpop.f32.mrf.mxu2 }
 0x857   : > { %v2611_v16 = vpop.f32.mrf.mxu1  ;;  %v2646_v17 = vsel %vm1745_vm9, %v2633_v41, -inf  ;;  %v2637_v18 = vsel %vm1745_vm9, %v2561_v15, -inf }
 0x858   : > { %2647 = vmax.xlane.f32.xlu2 %v2646_v17  ;;  %2638 = vmax.xlane.f32.xlu0 %v2637_v18  ;;  %v2337_v17 = vrot.slane %v2332_v4, 4  ;;  %v2393_v18 = vrot.slane %v2388_v5, 4 }
 0x85a   : > { %v2587_v19 = vpop.f32.mrf.mxu0 }
 0x85e   : > { %v2563_v38 = vpop.f32.mrf.mxu3  ;;  %v2635_v20 = vpop.f32.mrf.mxu2 }
 0x860   : > { %2644 = vmax.xlane.f32.xlu0 %v2643_v21 }
 0x868   : > { %2641 = vmax.xlane.f32.xlu0 %v2640_v22 }
 0x87c   : > { %3743 = vrot.lane.b32.xlu0 %v3737_v12, %s4304_s22 }
 0x8cb   : > { %v2648_v23 = vpop.xlane.xlu2 %2647  ;;  %v2639_v44 = vpop.xlane.xlu0 %2638 }
 0x8cc   : > { %v2652_v24 = vsub.f32 %v2633_v41, %v2648_v23  ;;  %v2649_v25 = vsub.f32 %v2561_v15, %v2639_v44  ;;  %v2405_v15 = vrot.slane %v2392_v2, 4 }
 0x8ce   : > { %v2659_v26 = vmul.f32 1.442695, %v2652_v24  ;;  %v2653_v27 = vmul.f32 1.442695, %v2649_v25 }
 0x8d0   : > { %3784 = vpow2.f32 %v2659_v26 }
 0x8d1   : > { %3786 = vpow2.f32 %v2653_v27 }
 0x8d3   : > { %v2645_v51 = vpop.xlane.xlu0 %2644 }
 0x8d4   : > { %v2651_v28 = vsub.f32 %v2609_v13, %v2645_v51 }
 0x8d6   : > { %v5046_v29 = vpop.eup %3784  ;;  %v2657_v30 = vmul.f32 1.442695, %v2651_v28 }
 0x8d7   : > { %v5048_v31 = vpop.eup %3786  ;;  %v2670_v32 = vsel %vm1745_vm9, %v5046_v29, 0.0 }
 0x8d8   : > { %3788 = vpow2.f32 %v2657_v30  ;;  %2671 = vadd.xlane.f32.xlu2 %v2670_v32  ;;  %v2661_v33 = vsel %vm1745_vm9, %v5048_v31, 0.0 }
 0x8d9   : > { %2662 = vadd.xlane.f32.xlu1 %v2661_v33 }
 0x8db   : > { %v2642_v34 = vpop.xlane.xlu0 %2641 }
 0x8dc   : > { %v2650_v35 = vsub.f32 %v2585_v14, %v2642_v34  ;;  %v2349_v14 = vrot.slane %v2336_v1, 4 }
 0x8de   : > { %v5054_v37 = vpop.eup %3788  ;;  %v2655_v39 = vmul.f32 1.442695, %v2650_v35 }
 0x8df   : > { %v2667_v40 = vsel %vm1745_vm9, %v5054_v37, 0.0 }
 0x8e0   : > { %3790 = vpow2.f32 %v2655_v39  ;;  %2668 = vadd.xlane.f32.xlu0 %v2667_v40 }
 0x8e6   : > { %v5058_v48 = vpop.eup %3790 }
 0x8e7   : > { %v2664_v53 = vsel %vm1745_vm9, %v5058_v48, 0.0 }
 0x8e8   : > { %2665 = vadd.xlane.f32.xlu2 %v2664_v53 }
 0x8ee   : > { %v3744_v3 = vpop.permute.xlu0 %3743 }
 0x8ef   : > { %v3746_v49 = vunpack.i.h.bf16 %v3744_v3  ;;  %v3745_v6 = vunpack.i.l.bf16 %v3744_v3 }
 0x8f1   : > { %v2369_v7 = vrot.slane %v3746_v49, 4  ;;  %v2372_v9 = vsel %vm1052_vm5, %v3746_v49, %v2371_v63  ;;  %v2313_v12 = vrot.slane %v3745_v6, 4  ;;  %v2316_v13 = vsel %vm1052_vm5, %v3745_v6, %v2315_v62 }
 0x8f2   : > { %v2380_v41 = vperm.slane %v2372_v9, %v4657_v50  ;;  %v2324_v16 = vperm.slane %v2316_v13, %v4657_v50 }
 0x8f3   : > { %v2370_v19 = vsel %vm1052_vm5, %v2369_v7, %v5035_v11  ;;  %v2314_v38 = vsel %vm1052_vm5, %v2313_v12, %v5033_v10 }
 0x8f4   : > { %v2376_v20 = vperm.slane %v2370_v19, %v4657_v50  ;;  %v2406_v21 = vsel %vm1052_vm5, %v2405_v15, %v2380_v41  ;;  %v2407_v22 = vrot.slane %v2380_v41, 4  ;;  %v2320_v23 = vperm.slane %v2314_v38, %v4657_v50 }
 0x8f5   : > { %v2412_v44 = vperm.slane %v2406_v21, %v4662_v61  ;;  %v2350_v24 = vsel %vm1052_vm5, %v2349_v14, %v2324_v16  ;;  %v2351_v25 = vrot.slane %v2324_v16, 4 }
 0x8f6   : > { %v2394_v26 = vsel %vm1052_vm5, %v2393_v18, %v2376_v20  ;;  %v2395_v27 = vrot.slane %v2376_v20, 4  ;;  %v2408_v11 = vsel %vm1052_vm5, %v2392_v2, %v2407_v22  ;;  %v2338_v51 = vsel %vm1052_vm5, %v2337_v17, %v2320_v23 }
 0x8f7   : > { %v2400_v10 = vperm.slane %v2394_v26, %v4662_v61  ;;  %v2416_v28 = vperm.slane %v2408_v11, %v4662_v61  ;;  %v2421_v30 = vrot.slane %v2412_v44, 4  ;;  %v2339_v57 = vrot.slane %v2320_v23, 4 }
 0x8f8   : > { %v2396_v32 = vsel %vm1052_vm5, %v2388_v5, %v2395_v27  ;;  %v2344_v33 = vperm.slane %v2338_v51, %v4662_v61  ;;  %v2352_v34 = vsel %vm1052_vm5, %v2336_v1, %v2351_v25  ;;  %v2356_v35 = vperm.slane %v2350_v24, %v4662_v61 }
 0x8f9   : > { %v2404_v39 = vperm.slane %v2396_v32, %v4662_v61  ;;  %v2417_v40 = vrot.slane %v2400_v10, 4  ;;  %v2422_v42 = vsel %vm1052_vm5, 0.0, %v2421_v30  ;;  %v2423_v36 = vrot.slane %v2416_v28, 4 }
 0x8fa   : > { %v2340_v45 = vsel %vm1052_vm5, %v2332_v4, %v2339_v57  ;;  %v2360_v46 = vperm.slane %v2352_v34, %v4662_v61  ;;  %v2361_v47 = vrot.slane %v2344_v33, 4  ;;  %v2365_v0 = vrot.slane %v2356_v35, 4 }
 0x8fb   : > { %v2418_v52 = vsel %vm1052_vm5, 0.0, %v2417_v40  ;;  %v2419_v53 = vrot.slane %v2404_v39, 4  ;;  %v2424_v54 = vsel %vm1052_vm5, 0.0, %v2423_v36  ;;  %v2490_v55 = vsel %vm1052_vm5, %v2423_v36, %v2412_v44 }
 0x8fc   : > { %v2494_v56 = vperm.slane %v2490_v55, %v4657_v50  ;;  %v2495_v58 = vrot.slane %v2424_v54, 4  ;;  %v2348_v59 = vperm.slane %v2340_v45, %v4662_v61  ;;  %v2362_v60 = vsel %vm1052_vm5, 0.0, %v2361_v47 }
 0x8fd   : > { %v2420_v62 = vsel %vm1052_vm5, 0.0, %v2419_v53  ;;  %v2479_v63 = vsel %vm1052_vm5, %v2419_v53, %v2400_v10  ;;  %v2366_v1 = vsel %vm1052_vm5, 0.0, %v2365_v0  ;;  %v2367_v2 = vrot.slane %v2360_v46, 4 }
 0x8fe   : > { %v2483_v3 = vperm.slane %v2479_v63, %v4657_v50  ;;  %v2484_v4 = vrot.slane %v2420_v62, 4  ;;  %v2496_v5 = vsel %vm1052_vm5, %v2495_v58, %v2422_v42  ;;  %v2515_v49 = vrot.slane %v2494_v56, 4 }
 0x8ff   : > { %v2500_v6 = vperm.slane %v2496_v5, %v4657_v50  ;;  %v2363_v7 = vrot.slane %v2348_v59, 4  ;;  %v2368_v9 = vsel %vm1052_vm5, 0.0, %v2367_v2  ;;  %v2436_v12 = vsel %vm1052_vm5, %v2367_v2, %v2356_v35 }
 0x900   : > { %v2485_v13 = vsel %vm1052_vm5, %v2484_v4, %v2418_v52  ;;  %v2440_v14 = vperm.slane %v2436_v12, %v4657_v50  ;;  %v2441_v15 = vrot.slane %v2368_v9, 4  ;;  %v2503_v41 = vrot.slane %v2483_v3, 4 }
 0x901   : > { %v2513_v16 = vrot.slane %v2500_v6, 4  ;;  %v2364_v17 = vsel %vm1052_vm5, 0.0, %v2363_v7  ;;  %v2425_v18 = vsel %vm1052_vm5, %v2363_v7, %v2344_v33  ;;  %v2489_v19 = vperm.slane %v2485_v13, %v4657_v50 }
 0x902   : > { %v2429_v38 = vperm.slane %v2425_v18, %v4657_v50  ;;  %v2430_v20 = vrot.slane %v2364_v17, 4  ;;  %v2442_v21 = vsel %vm1052_vm5, %v2441_v15, %v2366_v1  ;;  %v2461_v22 = vrot.slane %v2440_v14, 4 }
 0x903   : > { %v2446_v23 = vperm.slane %v2442_v21, %v4657_v50  ;;  %v2504_v44 = vsel %vm1052_vm5, %v2489_v19, %v2503_v41  ;;  %v2516_v24 = vsel %vm1052_vm5, %v2500_v6, %v2515_v49  ;;  %v2501_v25 = vrot.slane %v2489_v19, 4 }
 0x904   : > { %v2431_v26 = vsel %vm1052_vm5, %v2430_v20, %v2362_v60  ;;  %v2449_v27 = vrot.slane %v2429_v38, 4  ;;  %v2512_v11 = vperm.slane %v2504_v44, %v4662_v61  ;;  %v2524_v51 = vperm.slane %v2516_v24, %v4662_v61 }
 0x905   : > { %v2459_v10 = vrot.slane %v2446_v23, 4  ;;  %v2435_v28 = vperm.slane %v2431_v26, %v4657_v50  ;;  %v2462_v30 = vsel %vm1052_vm5, %v2446_v23, %v2461_v22  ;;  %v2502_v57 = vsel %vm1052_vm5, %v2501_v25, %v2483_v3 }
 0x906   : > { %v2470_v32 = vperm.slane %v2462_v30, %v4662_v61  ;;  %v2529_v33 = vrot.slane %v2524_v51, 4  ;;  %v2508_v34 = vperm.slane %v2502_v57, %v4662_v61  ;;  %v2514_v35 = vsel %vm1052_vm5, %v2513_v16, %v2494_v56 }
 0x907   : > { %v2450_v39 = vsel %vm1052_vm5, %v2435_v28, %v2449_v27  ;;  %v2447_v40 = vrot.slane %v2435_v28, 4  ;;  %v2460_v42 = vsel %vm1052_vm5, %v2459_v10, %v2440_v14  ;;  %v2520_v36 = vperm.slane %v2514_v35, %v4662_v61 }
 0x908   : > { %v2458_v45 = vperm.slane %v2450_v39, %v4662_v61  ;;  %v2475_v46 = vrot.slane %v2470_v32, 4  ;;  %v2530_v47 = vsel %vm1052_vm5, %v2529_v33, %v2512_v11  ;;  %v2466_v0 = vperm.slane %v2460_v42, %v4662_v61 }
 0x909   : > { %v2538_v52 = vpack.c.bf16 %v2530_v47, %v2530_v47  ;;  %v2448_v53 = vsel %vm1052_vm5, %v2447_v40, %v2429_v38  ;;  %v2525_v54 = vrot.slane %v2520_v36, 4  ;;  %v2531_v55 = vrot.slane %v2512_v11, 4 }
 0x90a   : > { %v2476_v56 = vsel %vm1052_vm5, %v2475_v46, %v2458_v45  ;;  %v2454_v58 = vperm.slane %v2448_v53, %v4662_v61  ;;  %v2471_v59 = vrot.slane %v2466_v0, 4  ;;  %v2477_v60 = vrot.slane %v2458_v45, 4 }
 0x90b   : > { %v2537_v62 = vpack.c.bf16 %v2476_v56, %v2476_v56  ;;  %v2732_v63 = vunpack.c.l.b16 %v2538_v52  ;;  %v2526_v1 = vsel %vm1052_vm5, %v2525_v54, %v2508_v34  ;;  %v2532_v2 = vsel %vm1052_vm5, %v2524_v51, %v2531_v55 }
 0x90c   : > { %v2472_v3 = vsel %vm1052_vm5, %v2471_v59, %v2454_v58  ;;  %v2534_v4 = vpack.c.bf16 %v2526_v1, %v2526_v1  ;;  %v2478_v5 = vsel %vm1052_vm5, %v2470_v32, %v2477_v60  ;;  %v2540_v49 = vpack.c.bf16 %v2532_v2, %v2532_v2 }
 0x90d   : > { %v2731_v6 = vunpack.c.l.b16 %v2537_v62  ;;  %v2533_v7 = vpack.c.bf16 %v2472_v3, %v2472_v3  ;;  %v2539_v9 = vpack.c.bf16 %v2478_v5, %v2478_v5  ;;  %v2473_v12 = vrot.slane %v2454_v58, 4 }
 0x90e   : > { %v2688_v13 = vunpack.c.l.b16 %v2534_v4  ;;  %v2754_v14 = vunpack.c.l.b16 %v2540_v49  ;;  %v2527_v15 = vrot.slane %v2508_v34, 4 }
 0x90f   : > { %v2733_v41 = vpack.c.b16 %v2732_v63, %v2731_v6  ;;  %v2687_v16 = vunpack.c.l.b16 %v2533_v7  ;;  %v2753_v17 = vunpack.c.l.b16 %v2539_v9  ;;  %v2474_v18 = vsel %vm1052_vm5, %v2466_v0, %v2473_v12 }
 0x910   : > { %v2528_v19 = vsel %vm1052_vm5, %v2520_v36, %v2527_v15  ;;  %v2535_v38 = vpack.c.bf16 %v2474_v18, %v2474_v18 }
 0x911   : > { %2745 = vmatpush.bf16.msra.mxu1 %v2733_v41  ;;  %v2689_v20 = vpack.c.b16 %v2688_v13, %v2687_v16  ;;  %v2755_v21 = vpack.c.b16 %v2754_v14, %v2753_v17  ;;  %v2536_v22 = vpack.c.bf16 %v2528_v19, %v2528_v19 }
 0x912   : > { %v2709_v23 = vunpack.c.l.b16 %v2535_v38 }
 0x913   : > { %2701 = vmatpush.bf16.msra.mxu3 %v2689_v20  ;;  %2767 = vmatpush.bf16.msra.mxu2 %v2755_v21  ;;  %v2710_v44 = vunpack.c.l.b16 %v2536_v22 }
 0x915   : > { %v2711_v24 = vpack.c.b16 %v2710_v44, %v2709_v23 }
 0x917   : > { %2723 = vmatpush.bf16.msrb.mxu0 %v2711_v24 }
 0x94b   : > { %v2672_v25 = vpop.xlane.xlu2 %2671 }
 0x94c   : > { %3792 = vrcp.f32 %v2672_v25  ;;  %v2663_v26 = vpop.xlane.xlu1 %2662 }
 0x94d   : > { %3794 = vrcp.f32 %v2663_v26 }
 0x952   : > { %v3793_v27 = vpop.eup %3792 }
 0x953   : > { %v3795_v11 = vpop.eup %3794  ;;  %v2680_v51 = vmul.f32 %v3793_v27, %v5046_v29  ;;  %v2669_v10 = vpop.xlane.xlu0 %2668 }
 0x954   : > { %v2677_v28 = vmul.f32 %v3795_v11, %v5048_v31  ;;  %3796 = vrcp.f32 %v2669_v10 }
 0x955   : > { %v2684_v30 = vpack.c.bf16 %v2680_v51, %v2680_v51 }
 0x956   : > { %v2681_v57 = vpack.c.bf16 %v2677_v28, %v2677_v28 }
 0x957   : > { %3458 = vmatmul.msk.bf16.vlgmr.msra.gmra.mxu2 %vm1745_vm9, %v2684_v30 }
 0x958   : > { %3455 = vmatmul.msk.bf16.vlgmr.msra.gmra.mxu3 %vm1745_vm9, %v2681_v57 }
 0x95a   : > { %v3797_v32 = vpop.eup %3796 }
 0x95b   : > { %v2679_v33 = vmul.f32 %v3797_v32, %v5054_v37  ;;  %v2666_v34 = vpop.xlane.xlu2 %2665 }
 0x95c   : > { %3798 = vrcp.f32 %v2666_v34 }
 0x95d   : > { %v2683_v35 = vpack.c.bf16 %v2679_v33, %v2679_v33 }
 0x95f   : > { %3457 = vmatmul.msk.bf16.vlgmr.msra.gmra.mxu1 %vm1745_vm9, %v2683_v35 }
 0x962   : > { %v3799_v39 = vpop.eup %3798 }
 0x963   : > { %v2678_v29 = vmul.f32 %v3799_v39, %v5058_v48 }
 0x965   : > { %v2682_v40 = vpack.c.bf16 %v2678_v29, %v2678_v29 }
 0x967   : > { %3456 = vmatmul.msk.bf16.vlgmr.msrb.gmra.mxu0 %vm1745_vm9, %v2682_v40 }
 0x9da   : > { %v2769_v31 = vpop.f32.mrf.mxu2 }
 0x9db   : > { %v2703_v42 = vpop.f32.mrf.mxu3  ;;  %v2785_v53 = vrot.slane %v2769_v31, 4 }
 0x9dc   : > { %v2747_v36 = vpop.f32.mrf.mxu1  ;;  %v2775_v45 = vrot.slane %v2703_v42, 4 }
 0x9dd   : > { %v2773_v46 = vrot.slane %v2747_v36, 4 }
 0x9de   : > { %v2776_v37 = vsel %vm1052_vm5, %v2747_v36, %v2775_v45 }
 0x9df   : > { %v2774_v47 = vsel %vm1052_vm5, %v2773_v46, %v2703_v42  ;;  %v2784_v55 = vperm.slane %v2776_v37, %v4657_v50 }
 0x9e0   : > { %v2780_v0 = vperm.slane %v2774_v47, %v4657_v50 }
 0x9e1   : > { %v2811_v1 = vrot.slane %v2784_v55, 4 }
 0x9e2   : > { %v2771_v52 = vpop.f32.mrf.mxu2  ;;  %v2799_v60 = vrot.slane %v2780_v0, 4 }
 0x9e3   : > { %v2705_v54 = vpop.f32.mrf.mxu3 }
 0x9e4   : > { %v2725_v48 = vpop.f32.mrf.mxu0  ;;  %v2749_v56 = vpop.f32.mrf.mxu1 }
 0x9e5   : > { %v2786_v58 = vsel %vm1052_vm5, %v2785_v53, %v2725_v48  ;;  %v2787_v59 = vrot.slane %v2725_v48, 4  ;;  %v3530_v53 = vld [vmem:[#allocation16 + $0x8] sm:$0xff] }
 0x9e6   : > { %v2792_v62 = vperm.slane %v2786_v58, %v4657_v50  ;;  %2928 = vmatpush.bf16.msrb.mxu3 %v3530_v53 }
 0x9e7   : > { %v2788_v63 = vsel %vm1052_vm5, %v2769_v31, %v2787_v59 }
 0x9e8   : > { %v2796_v2 = vperm.slane %v2788_v63, %v4657_v50  ;;  %v2797_v3 = vrot.slane %v2792_v62, 4  ;;  %v2800_v4 = vsel %vm1052_vm5, %v2792_v62, %v2799_v60  ;;  %v3757_v62 = vld [vmem:[#allocation17] ss:$0 sm:$0xff] }
 0x9e9   : > { %v2808_v5 = vperm.slane %v2800_v4, %v4662_v61 }
 0x9ea   : > { %v2798_v49 = vsel %vm1052_vm5, %v2797_v3, %v2780_v0  ;;  %v2809_v6 = vrot.slane %v2796_v2, 4  ;;  %v2812_v7 = vsel %vm1052_vm5, %v2796_v2, %v2811_v1 }
 0x9eb   : > { %v2804_v9 = vperm.slane %v2798_v49, %v4662_v61  ;;  %v2820_v12 = vperm.slane %v2812_v7, %v4662_v61  ;;  %v2823_v13 = vrot.slane %v2808_v5, 4 }
 0x9ec   : > { %v2810_v14 = vsel %vm1052_vm5, %v2809_v6, %v2784_v55  ;;  %v2727_v15 = vpop.f32.mrf.mxu0 }
 0x9ed   : > { %v2816_v41 = vperm.slane %v2810_v14, %v4662_v61  ;;  %v2821_v16 = vrot.slane %v2804_v9, 4  ;;  %v2824_v17 = vsel %vm1052_vm5, 0.0, %v2823_v13  ;;  %v2827_v18 = vrot.slane %v2820_v12, 4  ;;  %v3532_v12 = vld [vmem:[#allocation19 + $0x8] sm:$0xff] }
 0x9ee   : > { %v2829_v19 = vsel %vm1052_vm5, %v2823_v13, %v2804_v9  ;;  %v2834_v38 = vrot.slane %v2824_v17, 4  ;;  %2998 = vmatpush.bf16.msra.mxu0 %v3532_v12  ;;  %v3531_v13 = vld [vmem:[#allocation19] sm:$0xff] }
 0x9ef   : > { %v2822_v20 = vsel %vm1052_vm5, 0.0, %v2821_v16  ;;  %v2825_v21 = vrot.slane %v2816_v41, 4  ;;  %v2828_v22 = vsel %vm1052_vm5, 0.0, %v2827_v18  ;;  %v2833_v23 = vperm.slane %v2829_v19, %v4657_v50 }
 0x9f0   : > { %v2845_v44 = vrot.slane %v2828_v22, 4  ;;  %v2835_v24 = vsel %vm1052_vm5, %v2834_v38, %v2822_v20  ;;  %v2840_v25 = vsel %vm1052_vm5, %v2827_v18, %v2816_v41  ;;  %v3758_v20 = vld [vmem:[#allocation5] ss:$0 sm:$0xff] }
 0x9f1   : > { %v2826_v26 = vsel %vm1052_vm5, 0.0, %v2825_v21  ;;  %v2839_v27 = vperm.slane %v2835_v24, %v4657_v50  ;;  %v2844_v11 = vperm.slane %v2840_v25, %v4657_v50  ;;  %v2853_v51 = vrot.slane %v2833_v23, 4 }
 0x9f2   : > { %v2846_v10 = vsel %vm1052_vm5, %v2845_v44, %v2826_v26  ;;  %2999 = vmatpush.bf16.msra.mxu0 %v3531_v13 }
 0x9f3   : > { %v2850_v28 = vperm.slane %v2846_v10, %v4657_v50  ;;  %v2865_v30 = vrot.slane %v2844_v11, 4  ;;  %v2851_v57 = vrot.slane %v2839_v27, 4  ;;  %v2854_v32 = vsel %vm1052_vm5, %v2839_v27, %v2853_v51  ;;  %v3540_v27 = vld [vmem:[%s5289_s20 + $0x38] sm:$0xff]  ;;  %v3539_v10 = vld [vmem:[%s5289_s20 + $0x30] sm:$0xff] }
 0x9f4   : > { %v2862_v31 = vperm.slane %v2854_v32, %v4662_v61  ;;  %3114 = vmatpush.bf16.msrb.mxu1 %v3540_v27  ;;  %v3538_v32 = vld [vmem:[%s5289_s20 + $0x28] sm:$0xff] }
 0x9f5   : > { %v2866_v33 = vsel %vm1052_vm5, %v2850_v28, %v2865_v30  ;;  %v2852_v34 = vsel %vm1052_vm5, %v2851_v57, %v2833_v23  ;;  %v2863_v35 = vrot.slane %v2850_v28, 4  ;;  %v3759_v23 = vld [vmem:[#allocation7] ss:$0 sm:$0xff] }
 0x9f6   : > { %v2874_v39 = vperm.slane %v2866_v33, %v4662_v61  ;;  %v2858_v29 = vperm.slane %v2852_v34, %v4662_v61  ;;  %v2881_v0 = vrot.slane %v2862_v31, 4  ;;  %v3537_v34 = vld [vmem:[%s5289_s20 + $0x20] sm:$0xff] }
 0x9f7   : > { %v2864_v40 = vsel %vm1052_vm5, %v2863_v35, %v2844_v11  ;;  %v3536_v35 = vld [vmem:[%s5289_s20 + $0x18] sm:$0xff] }
 0x9f8   : > { %v2879_v42 = vrot.slane %v2874_v39, 4  ;;  %v2870_v50 = vperm.slane %v2864_v40, %v4662_v61  ;;  %v2877_v36 = vrot.slane %v2858_v29, 4  ;;  %v2882_v52 = vsel %vm1052_vm5, %v2874_v39, %v2881_v0  ;;  %v3529_v61 = vld [vmem:[#allocation16] sm:$0xff]  ;;  %3115 = vmatpush.bf16.msrb.mxu1 %v3539_v10  ;;  %v3533_v0 = vld [vmem:[%s5289_s20] sm:$0xff] }
 0x9f9   : > { %2929 = vmatpush.bf16.msrb.mxu3 %v3529_v61 }
 0x9fa   : > { %v2880_v45 = vsel %vm1052_vm5, %v2879_v42, %v2862_v31  ;;  %v2875_v46 = vrot.slane %v2870_v50, 4  ;;  %v2878_v47 = vsel %vm1052_vm5, %v2870_v50, %v2877_v36  ;;  %v3535_v31 = vld [vmem:[%s5289_s20 + $0x10] sm:$0xff] }
 0x9fb   : > { %2888 = vrot.lane.b32.xlu1 %v2880_v45, %s4310_s1  ;;  %2884 = vrot.lane.b32.xlu2 %v2878_v47, %s4311_s27  ;;  %s3144_s1 = sshll.u32 %s3140_s15, 4  ;;  %s3130_s27 = scalar_lea.sflag [#allocation4], %s888_s26  ;;  %s3145_s1 = int_to_ptr.hbm [resolvable:$true] %s3144_s1 }
 0x9fc   : > { %v2876_v37 = vsel %vm1052_vm5, %v2875_v46, %v2858_v29  ;;  %3116 = vmatpush.bf16.msrb.mxu1 %v3538_v32  ;;  %v3534_v46 = vld [vmem:[%s5289_s20 + $0x8] sm:$0xff]  ;;  %s4210_s17 = sshra.s32 %s3145_s1, 4  ;;  %s4211_s17 = int_to_ptr.hbm [resolvable:$true] %s4210_s17 }
 0x9fd   : > { %s4212_s4 = scalar_lea.hbm %s4211_s17, 8  ;;  %p4217_p3 = scmp.lt.s32.totalorder %s4211_s17, %s5336_s6 }
 0x9fe   : > { %p4213_p0 = scmp.ne.s32.totalorder %s4211_s17, %s4212_s4  ;;  %p4218_p4 = scmp.lt.s32.totalorder %s4216_s11, %s4212_s4 }
 0xa00   : > { %3117 = vmatpush.bf16.msrb.mxu1 %v3537_v34  ;;  %p4214_p1 = pnand %p4213_p0, %p4465_p5  ;;  %p4219_p7 = por %p4218_p4, %p4217_p3 }
 0xa02   : > { %p4215_p2 = pneg %p4214_p1 }
 0xa03   : > { %2892 = vrot.lane.b32.xlu2 %v2882_v52, %s4309_s25  ;;  %s3142_s25 = sshll.u32 %s890_s24, 4  ;;  %s3143_s25 = int_to_ptr.vmem [resolvable:$true] %s3142_s25 }
 0xa04   : > { %3118 = vmatpush.bf16.msrb.mxu1 %v3536_v35  ;;  %p4220_p8 = pnand %p4219_p7, %p4215_p2 }
 0xa08   : > { %3119 = vmatpush.bf16.msrb.mxu1 %v3535_v31 }
 0xa0c   : > { %3120 = vmatpush.bf16.msrb.mxu1 %v3534_v46 }
 0xa10   : > { %3121 = vmatpush.bf16.msrb.mxu1 %v3533_v0 }
 0xa55   : > { %v2885_v54 = vpop.permute.xlu2 %2884 }
 0xa56   : > { %v2895_v55 = vsel %vm1414_vm6, %v2876_v37, %v2885_v54 }
 0xa5d   : > { %v2893_v56 = vpop.permute.xlu2 %2892 }
 0xa6d   : > { %v2889_v48 = vpop.permute.xlu1 %2888 }
 0xa6e   : > { %v2896_v58 = vsel %vm1745_vm9, %v2895_v55, %v2889_v48 }
 0xa6f   : > { %v2897_v59 = vsel %vm1747_vm10, %v2896_v58, %v2893_v56 }
 0xa70   : > { %v2898_v60 = vpack.c.bf16 %v2897_v59, %v2897_v59 }
 0xa72   : > { %3467 = vmatmul.msk.bf16.vlgmr.msrb.gmra.mxu3 %vm911_vm0, %v2898_v60 }
 0xaf5   : > { %v2931_v63 = vpop.f32.mrf.mxu3 }
 0xaf6   : > { %v2932_v1 = vadd.f32 %v3757_v62, %v2931_v63 }
 0xaf8   : > { %v5202_v2 = vadd.f32 %v2932_v1, %v4876_v43 }
 0xafa   : > { %v2938_v3 = vsel %vm911_vm0, %v5202_v2, 0.0 }
 0xafb   : > { %2939 = vadd.xlane.f32.xlu0 %v2938_v3 }
 0xafd   : > { %v2933_v4 = vpop.f32.mrf.mxu3 }
 0xb6e   : > { %v2940_v5 = vpop.xlane.xlu0 %2939 }
 0xb6f   : > { %v2941_v49 = vmul.f32 %v2940_v5, %v4615_v8 }
 0xb71   : > { %v2942_v6 = vsub.f32 %v5202_v2, %v2941_v49 }
 0xb73   : > { %v2943_v7 = vmul.f32 %v2942_v6, %v2942_v6 }
 0xb75   : > { %v2944_v9 = vsel %vm911_vm0, %v2943_v7, 0.0 }
 0xb76   : > { %2945 = vadd.xlane.f32.xlu2 %v2944_v9 }
 0xbe9   : > { %v2946_v43 = vpop.xlane.xlu2 %2945 }
 0xbea   : > { %v2947_v14 = vmul.f32 %v2946_v43, %v4615_v8  ;;  %v3760_v8 = vld [vmem:[#allocation20] ss:$0 sm:$0xff]  ;;  %v3761_v43 = vld [vmem:[#allocation22] ss:$0 sm:$0xff] }
 0xbec   : > { %v2948_v15 = vadd.f32 1e-05, %v2947_v14 }
 0xbee   : > { %3800 = vrsqrt.f32 %v2948_v15  ;;  %vm2955_vm15 = vweird.f32 %v2948_v15 }
 0xbf4   : > { %v3801_v41 = vpop.eup %3800 }
 0xbf5   : > { %v2950_v16 = vmul.f32 %v3801_v41, %v2948_v15  ;;  %vm2956_vm14 = vweird.f32 %v3801_v41 }
 0xbf6   : > { %vm2957_vm1 = vmor %vm2955_vm15, %vm2956_vm14 }
 0xbf7   : > { %v2951_v17 = vmul.f32 %v3801_v41, %v2950_v16 }
 0xbf9   : > { %v2952_v18 = vmul.f32 0.5, %v2951_v17 }
 0xbfb   : > { %v2953_v19 = vsub.f32 1.5, %v2952_v18 }
 0xbfd   : > { %v2954_v38 = vmul.f32 %v3801_v41, %v2953_v19 }
 0xbff   : > { %v2958_v21 = vsel %vm2957_vm1, %v3801_v41, %v2954_v38 }
 0xc00   : > { %v2959_v22 = vmul.f32 %v2958_v21, %v2942_v6 }
 0xc02   : > { %v2963_v44 = vmul.f32 %v3758_v20, %v2959_v22 }
 0xc04   : > { %v2967_v24 = vadd.f32 %v3759_v23, %v2963_v44 }
 0xc06   : > { %v2968_v25 = vpack.c.bf16 %v2967_v24, %v2967_v24 }
 0xc08   : > { %3476 = vmatmul.msk.bf16.vlgmr.msra.gmra.mxu0 %vm911_vm0, %v2968_v25 }
 0xc85   : > { %v3001_v26 = vpop.f32.mrf.mxu0 }
 0xc86   : > { %v3002_v11 = vadd.f32 %v3760_v8, %v3001_v26 }
 0xc88   : > { %v3006_v51 = vmul.f32 0.70710677, %v3002_v11  ;;  %v3005_v7 = vmul.f32 0.5, %v3002_v11 }
 0xc8a   : > { %v3007_v28 = vand.u32 2147483647, %v3006_v51  ;;  %vm3040_vm6 = vcmp.ge.f32.partialorder %v3006_v51, 0.0 }
 0xc8c   : > { %v3008_v30 = vmul.f32 0.3275911, %v3007_v28  ;;  %v3034_v53 = vmul.f32 %v3007_v28, %v3007_v28 }
 0xc8d   : > { %v3003_v57 = vpop.f32.mrf.mxu0 }
 0xc8e   : > { %v3009_v33 = vadd.f32 1.0, %v3008_v30  ;;  %v3035_v55 = vsub.f32 0.0, %v3034_v53 }
 0xc90   : > { %3802 = vrcp.f32 %v3009_v33  ;;  %v3021_v42 = vand.u32 2147483648, %v3009_v33  ;;  %v3019_v36 = vand.u32 2147483647, %v3009_v33  ;;  %vm3015_vm3 = vweird.f32 %v3009_v33 }
 0xc91   : > { %v3036_v58 = vmul.f32 1.442695, %v3035_v55 }
 0xc92   : > { %v3022_v47 = vor.u32 1.1754944e-38, %v3021_v42  ;;  %vm3020_vm5 = vcmp.eq.f32.partialorder %v3019_v36, 8.507059e+37 }
 0xc93   : > { %3804 = vpow2.f32 %v3036_v58 }
 0xc96   : > { %v3803_v39 = vpop.eup %3802 }
 0xc97   : > { %v3011_v29 = vmul.f32 %v3803_v39, %v3009_v33  ;;  %vm3016_vm2 = vweird.f32 %v3803_v39 }
 0xc98   : > { %vm3017_vm4 = vmor %vm3015_vm3, %vm3016_vm2 }
 0xc99   : > { %v3012_v40 = vsub.f32 1.0, %v3011_v29  ;;  %v3805_v3 = vpop.eup %3804 }
 0xc9b   : > { %v3013_v50 = vmul.f32 %v3803_v39, %v3012_v40 }
 0xc9d   : > { %v3014_v45 = vadd.f32 %v3803_v39, %v3013_v50 }
 0xc9f   : > { %v3018_v37 = vsel %vm3017_vm4, %v3803_v39, %v3014_v45 }
 0xca0   : > { %v3023_v52 = vsel %vm3020_vm5, %v3022_v47, %v3018_v37 }
 0xca1   : > { %v3025_v61 = vmul.f32 1.0614054, %v3023_v52 }
 0xca3   : > { %v3026_v54 = vadd.f32 -1.4531521, %v3025_v61 }
 0xca5   : > { %v3027_v48 = vmul.f32 %v3026_v54, %v3023_v52 }
 0xca7   : > { %v3028_v56 = vadd.f32 1.4214138, %v3027_v48 }
 0xca9   : > { %v3029_v59 = vmul.f32 %v3028_v56, %v3023_v52 }
 0xcab   : > { %v3030_v60 = vadd.f32 -0.28449672, %v3029_v59 }
 0xcad   : > { %v3031_v62 = vmul.f32 %v3030_v60, %v3023_v52 }
 0xcaf   : > { %v3032_v63 = vadd.f32 0.2548296, %v3031_v62 }
 0xcb1   : > { %v3033_v1 = vmul.f32 %v3032_v63, %v3023_v52 }
 0xcb3   : > { %v3038_v4 = vmul.f32 %v3805_v3, %v3033_v1 }
 0xcb5   : > { %v3039_v5 = vsub.f32 1.0, %v3038_v4 }
 0xcb7   : > { %v3041_v49 = vsub.f32 0.0, %v3039_v5 }
 0xcb9   : > { %v3042_v6 = vsel %vm3040_vm6, %v3039_v5, %v3041_v49 }
 0xcba   : > { %v3043_v9 = vadd.f32 1.0, %v3042_v6 }
 0xcbc   : > { %v3044_v12 = vmul.f32 %v3043_v9, %v3005_v7 }
 0xcbe   : > { %v3045_v13 = vpack.c.bf16 %v3044_v12, %v3044_v12 }
 0xcc0   : > { %3122 = vmatmul.bf16.vlgmr.msrb.gmra.mxu1 %v3045_v13 }
 0xd3d   : > { %v3123_v14 = vpop.f32.mrf.mxu1 }
 0xd3e   : > { %v3124_v15 = vadd.f32 %v3761_v43, %v3123_v14 }
 0xd40   : > { %v3127_v41 = vadd.f32 %v3124_v15, %v5202_v2 }
 0xd42   : > { %3128 = vst.msk [vmem:[%s890_s24] sm:$0xff] %vm911_vm0, %v3127_v41 }
 0xd43   : > { %4223 = shalt.err (!%p4220_p8)
}
 0xd44   : > { %3593 = dma.vmem_to_hbm [thread:$0]  (%p4465_p5), %s3143_s25, 128, %s3145_s1, %s3130_s27  }
 0xd45   : > { %v3125_v2 = vpop.f32.mrf.mxu1 }
 0xd46 PF: > { %s5338_s26 = sld [smem:[#allocation34_spill]] }
 0xd47   : > { %s5339_s5 = sld [smem:[#allocation32_spill]] }
 0xd4c   : > { %p3665_p9 = scmp.ge.s32.totalorder %s5338_s26, 2 }
 0xd4d   : > { %s3156_s13 = sand.u32 1, %s5339_s5  }
 0xd4e   : > { %p3636_p10 = pnand %p3665_p9, %p4469_p6  ;;  %s3157_s30 = scalar_lea.sflag [#allocation4], %s3156_s13 }
 0xd50   : > { %p3637_p11 = pneg %p3636_p10 }
 0xd52   : > { %4269 = dma.done.wait (%p3637_p11), %s3157_s30, 128  }
 0xd53   : > { %4271 = vsyncadd (%p3637_p11), %s3157_s30, 4294967168  ;;  %s5341_s30 = sld [smem:[#allocation35_spill]]  ;;  %s5344_s3 = smov %s4278_s28 }
 0xd54   : > { %s5342_s15 = sld [smem:[#allocation33_spill]] }
 0xd55   : > { %s5343_s29 = sld [smem:[#allocation36_spill]] }
 0xd59   : > { %p39_p12 = scmp.ge.s32.totalorder %s5341_s30, 4  }
 0xd5a   : > { %s5345_s28 = smov %s5342_s15 }
 0xd5b   :  { %41 = sbr.rel (!%p39_p12) target bundleno = 23 (0x17), region = 199 }
 0xd60   :  { %3163 = vsyncpa [#allocation3], 1 }
 0xd61   :  { %3165 = vsyncpa [#allocation3 + $0x1], 1 }
 0xd62   :  { %3166 = vsyncpa [#allocation6], 1 }
 0xd63   :  { %3167 = vsyncpa [#allocation9], 1 }
 0xd64   :  { %3168 = vsyncpa [#allocation12], 1 }
 0xd65   :  { %3169 = vsyncpa [#allocation15], 1 }
 0xd66   :  { %3170 = vsyncpa [#allocation18], 1 }
 0xd67   :  { %3171 = vsyncpa [#allocation21], 1 }
 0xd68   :  { %3172 = vsyncpa [#allocation4], 1 }
 0xd69   :  { %3174 = vsyncpa [#allocation4 + $0x1], 1 }

</bundles_post_ra>
